<compile_context>
chip_gen: v7x
topology: tpu7x:2x2x1
jax: 0.10.0
libtpu: 0.0.40
codegen_flags: <defaults>
</compile_context>

<pallas_src>
import numpy as np
import jax
import jax.numpy as jnp
from jax.experimental import pallas as pl
from jax.experimental.pallas import tpu as pltpu

# ---- model hyper-parameters (small, consistent with the module) ----
B, T, D = 4, 8, 32          # batch, time, size
H, DK = 4, 8                # attention heads, head dim (H * DK == D)
HFF = 64                    # positionwise feed-forward hidden units
K = 3                       # TDNN kernel size ("same" padding = 1)
EPS = 1e-5                  # layer-norm epsilon
FF_SCALE = 0.5              # macaron feed-forward present
ATT_SCALE = 1.0 / float(np.sqrt(DK))


def _layer_norm(v, g, b):
    mu = jnp.mean(v, axis=-1, keepdims=True)
    var = jnp.mean((v - mu) ** 2, axis=-1, keepdims=True)
    return (v - mu) * jax.lax.rsqrt(var + EPS) * g + b


def encoder_layer_kernel(
    len_ref,                                            # scalar-prefetch: (B,) int32 in SMEM
    x_ref, norms_ref,
    ffm_w1_ref, ffm_b1_ref, ffm_w2_ref, ffm_b2_ref,
    wattn_ref, battn_ref, conv_w_ref, conv_b_ref,
    ff_w1_ref, ff_b1_ref, ff_w2_ref, ff_b2_ref,
    out_ref, k_out_ref, v_out_ref,
):
    bb, t, d = x_ref.shape
    base = pl.program_id(0) * bb                        # first batch index of this block

    def ln(v, idx):
        return _layer_norm(v, norms_ref[idx, 0:1, :], norms_ref[idx, 1:2, :])

    def ffn(v, w1, b1, w2, b2):
        h = jnp.maximum(jnp.dot(v, w1, preferred_element_type=jnp.float32) + b1, 0.0)
        return jnp.dot(h, w2, preferred_element_type=jnp.float32) + b2

    # fold batch block into the matmul M dimension: (bb, T, D) -> (bb*T, D)
    x = x_ref[...].reshape(bb * t, d)

    # ---- per-sequence length field & masks, built in-kernel from iota ----
    b_iota = jax.lax.broadcasted_iota(jnp.int32, (bb, 1, 1), 0)
    lens_field = jnp.zeros((bb, 1, 1), jnp.int32)
    for i in range(bb):                                 # bb is small & static
        lens_field = jnp.where(b_iota == i, len_ref[base + i], lens_field)
    col_iota = jax.lax.broadcasted_iota(jnp.int32, (bb, 1, t), 2)
    row_iota = jax.lax.broadcasted_iota(jnp.int32, (bb, t, 1), 1)
    col_valid = col_iota < lens_field                   # (bb, 1, t)
    row_valid = row_iota < lens_field                   # (bb, t, 1)
    att_bias = jnp.where(col_valid, 0.0, -1e30)         # additive score mask (cols)
    att_keep = jnp.logical_and(row_valid, col_valid)    # (bb, t, t) post-softmax keep
    mpad_rows = row_valid.astype(jnp.float32).reshape(bb * t, 1)   # TDNN padding mask
    row_local = jax.lax.broadcasted_iota(jnp.int32, (bb, t, 1), 1).reshape(bb * t, 1)

    # ---- macaron feed-forward (half-step residual) ----
    x = x + FF_SCALE * ffn(ln(x, 0), ffm_w1_ref[...], ffm_b1_ref[...],
                           ffm_w2_ref[...], ffm_b2_ref[...])

    # ---- multi-headed self attention (plain MHA; pos_emb unused) ----
    xn = ln(x, 1)
    q = jnp.dot(xn, wattn_ref[0], preferred_element_type=jnp.float32) + battn_ref[0:1, :]
    k = jnp.dot(xn, wattn_ref[1], preferred_element_type=jnp.float32) + battn_ref[1:2, :]
    v = jnp.dot(xn, wattn_ref[2], preferred_element_type=jnp.float32) + battn_ref[2:3, :]

    # lane-dense KV-cache slabs (post-projection k/v incl. bias, wenet contract);
    # the wrapper splits them into (B, H, T, DK).
    k_out_ref[...] = k.reshape(bb, t, d)
    v_out_ref[...] = v.reshape(bb, t, d)

    q3 = q.reshape(bb, t, d)
    k3 = k.reshape(bb, t, d)
    v3 = v.reshape(bb, t, d)

    # Heads via static lane-slice loop (H small); each einsum is batched over the
    # whole batch block (single batch dim -> clean Mosaic dot_general lowering).
    att_heads = []
    for h in range(H):
        sl = slice(h * DK, (h + 1) * DK)
        s = jnp.einsum("btd,bsd->bts", q3[:, :, sl], k3[:, :, sl],
                       preferred_element_type=jnp.float32) * ATT_SCALE + att_bias
        m = jnp.max(s, axis=-1, keepdims=True)
        e = jnp.exp(s - m)
        p = e * pl.reciprocal(jnp.sum(e, axis=-1, keepdims=True), approx=True)
        p = jnp.where(att_keep, p, 0.0)                 # zero padded rows/cols post-softmax
        att_heads.append(jnp.einsum("bts,bsd->btd", p, v3[:, :, sl],
                                    preferred_element_type=jnp.float32))
    att = jnp.concatenate(att_heads, axis=-1).reshape(bb * t, d)
    x = x + jnp.dot(att, wattn_ref[3], preferred_element_type=jnp.float32) + battn_ref[3:4, :]

    # ---- TDNN: "same" 1-D conv over time (K=3) + ReLU, masked (im2col form) ----
    xm = ln(x, 2) * mpad_rows                           # (bb*T, D), padded rows zeroed
    # +/-1 time-shifted copies via one XLU roll each over the flat slab; rows at
    # sequence boundaries (local t==0 / t==T-1) are zeroed so no cross-sequence leak.
    x_prev = jnp.where(row_local == 0, 0.0, pltpu.roll(xm, 1, axis=0))
    x_next = jnp.where(row_local == t - 1, 0.0, pltpu.roll(xm, bb * t - 1, axis=0))
    xcat = jnp.concatenate([x_prev, xm, x_next], axis=-1)          # (bb*T, 3D) im2col slab
    y = jnp.dot(xcat, conv_w_ref[...], preferred_element_type=jnp.float32) + conv_b_ref[...]
    x = x + jnp.maximum(y, 0.0) * mpad_rows

    # ---- feed-forward (half-step residual) ----
    x = x + FF_SCALE * ffn(ln(x, 3), ff_w1_ref[...], ff_b1_ref[...],
                           ff_w2_ref[...], ff_b2_ref[...])

    # ---- final layer norm (present because tdnn_module is not None) ----
    out_ref[...] = ln(x, 4).reshape(bb, t, d)


def tdnn_conformer_layer(x, lengths, params, *, batch_block=None):
    """Pallas-backed forward.  Returns (x, mask, new_att_cache, new_tdnn_cache).

    `lengths` (B,) int32 replaces shipping the (B,T,T) mask through HBM; masks
    are rebuilt in-kernel from iota (wenet length-based masks).
    """
    B_, T_, D_ = x.shape
    if batch_block is None:
        # keep >=2 parallel grid steps so both v7x TensorCores get work, while
        # folding batch_block*T rows into every matmul inside each step.
        # (pass batch_block=B_ to fully collapse the grid on single-TC v5e/v6e)
        batch_block = B_ // 2 if (B_ >= 2 and B_ % 2 == 0) else 1
    assert B_ % batch_block == 0
    nblk = B_ // batch_block
    lengths = lengths.astype(jnp.int32)
    conv_w_flat = params["conv_w"].reshape(K * D_, D_)   # im2col weight layout (3D, D)

    def bcast(shape):
        n = len(shape)
        return pl.BlockSpec(shape, lambda b, lens, _n=n: (0,) * _n)

    seq_spec = pl.BlockSpec((batch_block, T_, D_), lambda b, lens: (b, 0, 0))

    in_specs = [
        seq_spec,                                                        # x
        bcast((5, 2, D_)),                                               # layer-norm params
        bcast((D_, HFF)), bcast((1, HFF)), bcast((HFF, D_)), bcast((1, D_)),   # macaron FF
        bcast((4, D_, D_)), bcast((4, D_)),                              # attention q/k/v/o
        bcast((K * D_, D_)), bcast((1, D_)),                             # TDNN conv (im2col)
        bcast((D_, HFF)), bcast((1, HFF)), bcast((HFF, D_)), bcast((1, D_)),   # FF
    ]
    out_specs = [seq_spec, seq_spec, seq_spec]                           # x_out, k slab, v slab
    out_shape = [jax.ShapeDtypeStruct((B_, T_, D_), jnp.float32)] * 3

    x_out, k_slab, v_slab = pl.pallas_call(
        encoder_layer_kernel,
        out_shape=out_shape,
        grid_spec=pltpu.PrefetchScalarGridSpec(
            num_scalar_prefetch=1,
            grid=(nblk,),
            in_specs=in_specs,
            out_specs=out_specs,
        ),
        compiler_params=pltpu.CompilerParams(
            dimension_semantics=("parallel",),
            vmem_limit_bytes=32 * 1024 * 1024,   # explicit budget (fits v5e/v6e/v7x)
        ),
    )(lengths, x,
      params["norms"],
      params["ffm_w1"], params["ffm_b1"], params["ffm_w2"], params["ffm_b2"],
      params["wattn"], params["battn"], conv_w_flat, params["conv_b"],
      params["ff_w1"], params["ff_b1"], params["ff_w2"], params["ff_b2"])

    # wenet-style att cache: (B, H, T, DK), split outside the kernel (cheap XLA ops).
    k_cache = k_slab.reshape(B_, T_, H, DK).transpose(0, 2, 1, 3)
    v_cache = v_slab.reshape(B_, T_, H, DK).transpose(0, 2, 1, 3)
    new_att_cache = (k_cache, v_cache)

    # masks returned to match the module's (x, mask, att_cache, tdnn_cache) contract.
    mask_pad = (jnp.arange(T_)[None, None, :] < lengths[:, None, None]).astype(jnp.float32)
    mask = jnp.transpose(mask_pad, (0, 2, 1)) * mask_pad
    # TODO(synk): tdnn_module here is non-streaming ("same" conv), so it emits an
    # empty cache just like the reference does when tdnn_module is None.
    new_tdnn_cache = jnp.zeros((0, 0, 0), jnp.float32)
    return x_out, mask, new_att_cache, new_tdnn_cache


# -------------------- pure-JAX reference (for verification) --------------------
def reference_layer(x, mask, mask_pad, params):
    norms = params["norms"]
    hp = jax.lax.Precision.HIGHEST

    def ln(v, i):
        return _layer_norm(v, norms[i, 0], norms[i, 1])

    mpad = jnp.transpose(mask_pad, (0, 2, 1))                 # (B, T, 1)

    # macaron FF
    xn = ln(x, 0)
    h = jnp.maximum(jnp.dot(xn, params["ffm_w1"], precision=hp) + params["ffm_b1"][0], 0.0)
    x = x + FF_SCALE * (jnp.dot(h, params["ffm_w2"], precision=hp) + params["ffm_b2"][0])

    # MHA
    xn = ln(x, 1)
    q = jnp.dot(xn, params["wattn"][0], precision=hp) + params["battn"][0]
    k = jnp.dot(xn, params["wattn"][1], precision=hp) + params["battn"][1]
    v = jnp.dot(xn, params["wattn"][2], precision=hp) + params["battn"][2]
    qh = q.reshape(B, T, H, DK).transpose(0, 2, 1, 3)
    kh = k.reshape(B, T, H, DK).transpose(0, 2, 1, 3)
    vh = v.reshape(B, T, H, DK).transpose(0, 2, 1, 3)
    scores = jnp.einsum("bhtd,bhsd->bhts", qh, kh, precision=hp) * ATT_SCALE
    m4 = mask[:, None, :, :]
    scores = jnp.where(m4 > 0.0, scores, -1e30)
    p = jax.nn.softmax(scores, axis=-1)
    p = jnp.where(m4 > 0.0, p, 0.0)
    att = jnp.einsum("bhts,bhsd->bhtd", p, vh, precision=hp)
    att = att.transpose(0, 2, 1, 3).reshape(B, T, D)
    x = x + jnp.dot(att, params["wattn"][3], precision=hp) + params["battn"][3]

    # TDNN
    xn = ln(x, 2) * mpad
    xpad = jnp.pad(xn, ((0, 0), (1, 1), (0, 0)))
    y = jnp.zeros((B, T, D), jnp.float32) + params["conv_b"][0]
    for kk in range(K):
        y = y + jnp.dot(xpad[:, kk:kk + T], params["conv_w"][kk], precision=hp)
    x = x + jnp.maximum(y, 0.0) * mpad

    # FF
    xn = ln(x, 3)
    h = jnp.maximum(jnp.dot(xn, params["ff_w1"], precision=hp) + params["ff_b1"][0], 0.0)
    x = x + FF_SCALE * (jnp.dot(h, params["ff_w2"], precision=hp) + params["ff_b2"][0])

    return ln(x, 4)


def init_params(key):
    ks = jax.random.split(key, 16)

    def w(k, shape, s=0.08):
        return (jax.random.normal(k, shape, jnp.float32) * s).astype(jnp.float32)

    gammas = 1.0 + 0.05 * jax.random.normal(ks[0], (5, D), jnp.float32)
    betas = 0.05 * jax.random.normal(ks[1], (5, D), jnp.float32)
    return {
        "norms": jnp.stack([gammas, betas], axis=1),          # (5, 2, D)
        "ffm_w1": w(ks[2], (D, HFF)), "ffm_b1": w(ks[3], (1, HFF), 0.02),
        "ffm_w2": w(ks[4], (HFF, D)), "ffm_b2": w(ks[5], (1, D), 0.02),
        "wattn": w(ks[6], (4, D, D)), "battn": w(ks[7], (4, D), 0.02),
        "conv_w": w(ks[8], (K, D, D)), "conv_b": w(ks[9], (1, D), 0.02),
        "ff_w1": w(ks[10], (D, HFF)), "ff_b1": w(ks[11], (1, HFF), 0.02),
        "ff_w2": w(ks[12], (HFF, D)), "ff_b2": w(ks[13], (1, D), 0.02),
    }


if __name__ == "__main__":
    key = jax.random.PRNGKey(0)
    kp, kx = jax.random.split(key)
    params = init_params(kp)

    x = jax.random.normal(kx, (B, T, D), jnp.float32)
    lengths = jnp.array([T, T - 2, T, T - 3], jnp.int32)
    pos_emb = jnp.zeros((1, T, D), jnp.float32)   # accepted but unused (plain MHA)

    x_out, mask_out, (k_cache, v_cache), tdnn_cache = tdnn_conformer_layer(x, lengths, params)
    jax.block_until_ready(x_out)
    jax.block_until_ready(k_cache)
    jax.block_until_ready(v_cache)

    # verify against the f32 pure-JAX reference (length-derived masks, like wenet)
    mask_pad = (jnp.arange(T)[None, None, :] < lengths[:, None, None]).astype(jnp.float32)  # (B,1,T)
    mask = mask_pad.transpose(0, 2, 1) * mask_pad                                           # (B,T,T)
    x_ref = reference_layer(x, mask, mask_pad, params)
    np.testing.assert_allclose(np.asarray(x_out), np.asarray(x_ref), rtol=2e-3, atol=2e-3)

    print("KERNEL_OK")
</pallas_src>

<mosaic_0001>
module attributes {stable_mosaic.version = 11 : i64} {
  func.func @encoder_layer_kernel(%arg0: i32, %arg1: memref<4xi32, #tpu.memory_space<smem>>, %arg2: memref<2x8x32xf32, #tpu.memory_space<vmem>>, %arg3: memref<5x2x32xf32, #tpu.memory_space<vmem>>, %arg4: memref<32x64xf32, #tpu.memory_space<vmem>>, %arg5: memref<1x64xf32, #tpu.memory_space<vmem>>, %arg6: memref<64x32xf32, #tpu.memory_space<vmem>>, %arg7: memref<1x32xf32, #tpu.memory_space<vmem>>, %arg8: memref<4x32x32xf32, #tpu.memory_space<vmem>>, %arg9: memref<4x32xf32, #tpu.memory_space<vmem>>, %arg10: memref<96x32xf32, #tpu.memory_space<vmem>>, %arg11: memref<1x32xf32, #tpu.memory_space<vmem>>, %arg12: memref<32x64xf32, #tpu.memory_space<vmem>>, %arg13: memref<1x64xf32, #tpu.memory_space<vmem>>, %arg14: memref<64x32xf32, #tpu.memory_space<vmem>>, %arg15: memref<1x32xf32, #tpu.memory_space<vmem>>, %arg16: memref<2x8x32xf32, #tpu.memory_space<vmem>>, %arg17: memref<2x8x32xf32, #tpu.memory_space<vmem>>, %arg18: memref<2x8x32xf32, #tpu.memory_space<vmem>>) attributes {dimension_semantics = [#tpu.dimension_semantics<parallel>], iteration_bounds = array<i64: 2>, scalar_prefetch = 1 : i64, scratch_operands = 0 : i64, tpu.core_type = #tpu.core_type<tc>, window_params = [{transform_indices = @transform_0, window_bounds = array<i64: 2, 8, 32>}, {pipeline_mode = #tpu.pipeline_mode<synchronous>, transform_indices = @transform_1, window_bounds = array<i64: 5, 2, 32>}, {pipeline_mode = #tpu.pipeline_mode<synchronous>, transform_indices = @transform_2, window_bounds = array<i64: 32, 64>}, {pipeline_mode = #tpu.pipeline_mode<synchronous>, transform_indices = @transform_3, window_bounds = array<i64: 1, 64>}, {pipeline_mode = #tpu.pipeline_mode<synchronous>, transform_indices = @transform_4, window_bounds = array<i64: 64, 32>}, {pipeline_mode = #tpu.pipeline_mode<synchronous>, transform_indices = @transform_5, window_bounds = array<i64: 1, 32>}, {pipeline_mode = #tpu.pipeline_mode<synchronous>, transform_indices = @transform_6, window_bounds = array<i64: 4, 32, 32>}, {pipeline_mode = #tpu.pipeline_mode<synchronous>, transform_indices = @transform_7, window_bounds = array<i64: 4, 32>}, {pipeline_mode = #tpu.pipeline_mode<synchronous>, transform_indices = @transform_8, window_bounds = array<i64: 96, 32>}, {pipeline_mode = #tpu.pipeline_mode<synchronous>, transform_indices = @transform_9, window_bounds = array<i64: 1, 32>}, {pipeline_mode = #tpu.pipeline_mode<synchronous>, transform_indices = @transform_10, window_bounds = array<i64: 32, 64>}, {pipeline_mode = #tpu.pipeline_mode<synchronous>, transform_indices = @transform_11, window_bounds = array<i64: 1, 64>}, {pipeline_mode = #tpu.pipeline_mode<synchronous>, transform_indices = @transform_12, window_bounds = array<i64: 64, 32>}, {pipeline_mode = #tpu.pipeline_mode<synchronous>, transform_indices = @transform_13, window_bounds = array<i64: 1, 32>}, {transform_indices = @transform_14, window_bounds = array<i64: 2, 8, 32>}, {transform_indices = @transform_15, window_bounds = array<i64: 2, 8, 32>}, {transform_indices = @transform_16, window_bounds = array<i64: 2, 8, 32>}]} {
    %c2_i32 = arith.constant 2 : i32
    %0 = arith.muli %arg0, %c2_i32 : i32
    %c0 = arith.constant 0 : index
    %c0_0 = arith.constant 0 : index
    %c0_1 = arith.constant 0 : index
    %1 = vector.load %arg2[%c0, %c0_0, %c0_1] : memref<2x8x32xf32, #tpu.memory_space<vmem>>, vector<2x8x32xf32>
    %2 = vector.shape_cast %1 : vector<2x8x32xf32> to vector<16x32xf32>
    %3 = tpu.iota {dimensions = array<i32: 0>} : vector<2x1x1xi32>
    %c0_i32 = arith.constant 0 : i32
    %4 = vector.broadcast %c0_i32 : i32 to vector<2x1x1xi32>
    %c0_i32_2 = arith.constant 0 : i32
    %5 = vector.broadcast %c0_i32_2 : i32 to vector<2x1x1xi32>
    %6 = arith.cmpi eq, %3, %5 : vector<2x1x1xi32>
    %c0_i32_3 = arith.constant 0 : i32
    %7 = arith.addi %0, %c0_i32_3 : i32
    %8 = arith.index_cast %7 : i32 to index
    %9 = memref.load %arg1[%8] : memref<4xi32, #tpu.memory_space<smem>>
    %10 = vector.broadcast %9 : i32 to vector<2x1x1xi32>
    %11 = arith.select %6, %10, %4 : vector<2x1x1xi1>, vector<2x1x1xi32>
    %c1_i32 = arith.constant 1 : i32
    %12 = vector.broadcast %c1_i32 : i32 to vector<2x1x1xi32>
    %13 = arith.cmpi eq, %3, %12 : vector<2x1x1xi32>
    %c1_i32_4 = arith.constant 1 : i32
    %14 = arith.addi %0, %c1_i32_4 : i32
    %15 = arith.index_cast %14 : i32 to index
    %16 = memref.load %arg1[%15] : memref<4xi32, #tpu.memory_space<smem>>
    %17 = vector.broadcast %16 : i32 to vector<2x1x1xi32>
    %18 = arith.select %13, %17, %11 : vector<2x1x1xi1>, vector<2x1x1xi32>
    %19 = tpu.iota {dimensions = array<i32: 2>} : vector<2x1x8xi32>
    %20 = tpu.iota {dimensions = array<i32: 1>} : vector<2x8x1xi32>
    %21 = vector.broadcast %18 : vector<2x1x1xi32> to vector<2x1x8xi32>
    %22 = arith.cmpi slt, %19, %21 : vector<2x1x8xi32>
    %23 = vector.broadcast %18 : vector<2x1x1xi32> to vector<2x8x1xi32>
    %24 = arith.cmpi slt, %20, %23 : vector<2x8x1xi32>
    %cst = arith.constant 0.000000e+00 : f32
    %cst_5 = arith.constant -1.000000e+30 : f32
    %25 = vector.broadcast %cst : f32 to vector<2x1x8xf32>
    %26 = vector.broadcast %cst_5 : f32 to vector<2x1x8xf32>
    %27 = arith.select %22, %25, %26 : vector<2x1x8xi1>, vector<2x1x8xf32>
    %28 = vector.broadcast %24 : vector<2x8x1xi1> to vector<2x8x8xi1>
    %29 = vector.broadcast %22 : vector<2x1x8xi1> to vector<2x8x8xi1>
    %30 = arith.andi %28, %29 : vector<2x8x8xi1>
    %31 = arith.extui %24 : vector<2x8x1xi1> to vector<2x8x1xi32>
    %32 = arith.sitofp %31 : vector<2x8x1xi32> to vector<2x8x1xf32>
    %33 = vector.shape_cast %32 : vector<2x8x1xf32> to vector<16x1xf32>
    %34 = tpu.iota {dimensions = array<i32: 1>} : vector<2x8x1xi32>
    %35 = vector.shape_cast %34 : vector<2x8x1xi32> to vector<16x1xi32>
    %c0_6 = arith.constant 0 : index
    %c0_7 = arith.constant 0 : index
    %c0_8 = arith.constant 0 : index
    %36 = vector.load %arg3[%c0_6, %c0_7, %c0_8] : memref<5x2x32xf32, #tpu.memory_space<vmem>>, vector<1x1x32xf32>
    %37 = vector.shape_cast %36 : vector<1x1x32xf32> to vector<1x32xf32>
    %c0_9 = arith.constant 0 : index
    %c1 = arith.constant 1 : index
    %c0_10 = arith.constant 0 : index
    %38 = vector.load %arg3[%c0_9, %c1, %c0_10] : memref<5x2x32xf32, #tpu.memory_space<vmem>>, vector<1x1x32xf32>
    %39 = vector.shape_cast %38 : vector<1x1x32xf32> to vector<1x32xf32>
    %cst_11 = arith.constant dense<0.000000e+00> : vector<16xf32>
    %40 = vector.multi_reduction <add>, %2, %cst_11 [1] : vector<16x32xf32> to vector<16xf32>
    %41 = vector.shape_cast %40 : vector<16xf32> to vector<16x1xf32>
    %cst_12 = arith.constant 3.200000e+01 : f32
    %42 = vector.broadcast %cst_12 : f32 to vector<16x1xf32>
    %43 = arith.divf %41, %42 : vector<16x1xf32>
    %44 = vector.broadcast %43 : vector<16x1xf32> to vector<16x32xf32>
    %45 = arith.subf %2, %44 : vector<16x32xf32>
    %46 = arith.mulf %45, %45 : vector<16x32xf32>
    %cst_13 = arith.constant dense<0.000000e+00> : vector<16xf32>
    %47 = vector.multi_reduction <add>, %46, %cst_13 [1] : vector<16x32xf32> to vector<16xf32>
    %48 = vector.shape_cast %47 : vector<16xf32> to vector<16x1xf32>
    %cst_14 = arith.constant 3.200000e+01 : f32
    %49 = vector.broadcast %cst_14 : f32 to vector<16x1xf32>
    %50 = arith.divf %48, %49 : vector<16x1xf32>
    %51 = vector.broadcast %43 : vector<16x1xf32> to vector<16x32xf32>
    %52 = arith.subf %2, %51 : vector<16x32xf32>
    %cst_15 = arith.constant 9.99999974E-6 : f32
    %53 = vector.broadcast %cst_15 : f32 to vector<16x1xf32>
    %54 = arith.addf %50, %53 : vector<16x1xf32>
    %55 = math.rsqrt %54 : vector<16x1xf32>
    %56 = vector.broadcast %55 : vector<16x1xf32> to vector<16x32xf32>
    %57 = arith.mulf %52, %56 : vector<16x32xf32>
    %58 = vector.broadcast %37 : vector<1x32xf32> to vector<16x32xf32>
    %59 = arith.mulf %57, %58 : vector<16x32xf32>
    %60 = vector.broadcast %39 : vector<1x32xf32> to vector<16x32xf32>
    %61 = arith.addf %59, %60 : vector<16x32xf32>
    %c0_16 = arith.constant 0 : index
    %c0_17 = arith.constant 0 : index
    %62 = vector.load %arg4[%c0_16, %c0_17] : memref<32x64xf32, #tpu.memory_space<vmem>>, vector<32x64xf32>
    %c0_18 = arith.constant 0 : index
    %c0_19 = arith.constant 0 : index
    %63 = vector.load %arg5[%c0_18, %c0_19] : memref<1x64xf32, #tpu.memory_space<vmem>>, vector<1x64xf32>
    %c0_20 = arith.constant 0 : index
    %c0_21 = arith.constant 0 : index
    %64 = vector.load %arg6[%c0_20, %c0_21] : memref<64x32xf32, #tpu.memory_space<vmem>>, vector<64x32xf32>
    %c0_22 = arith.constant 0 : index
    %c0_23 = arith.constant 0 : index
    %65 = vector.load %arg7[%c0_22, %c0_23] : memref<1x32xf32, #tpu.memory_space<vmem>>, vector<1x32xf32>
    %cst_24 = arith.constant dense<0.000000e+00> : vector<16x64xf32>
    %66 = tpu.matmul %61, %62, %cst_24 {dimension_numbers = #tpu.dot_dimension_numbers<[1], [0], [0], [1], [0, 0, 1, 1], [], []>} : vector<16x32xf32>, vector<32x64xf32>, vector<16x64xf32> -> vector<16x64xf32>
    %67 = vector.broadcast %63 : vector<1x64xf32> to vector<16x64xf32>
    %68 = arith.addf %66, %67 : vector<16x64xf32>
    %cst_25 = arith.constant 0.000000e+00 : f32
    %69 = vector.broadcast %cst_25 : f32 to vector<16x64xf32>
    %70 = arith.maximumf %68, %69 : vector<16x64xf32>
    %cst_26 = arith.constant dense<0.000000e+00> : vector<16x32xf32>
    %71 = tpu.matmul %70, %64, %cst_26 {dimension_numbers = #tpu.dot_dimension_numbers<[1], [0], [0], [1], [0, 0, 1, 1], [], []>} : vector<16x64xf32>, vector<64x32xf32>, vector<16x32xf32> -> vector<16x32xf32>
    %72 = vector.broadcast %65 : vector<1x32xf32> to vector<16x32xf32>
    %73 = arith.addf %71, %72 : vector<16x32xf32>
    %cst_27 = arith.constant 5.000000e-01 : f32
    %74 = vector.broadcast %cst_27 : f32 to vector<16x32xf32>
    %75 = arith.mulf %74, %73 : vector<16x32xf32>
    %76 = arith.addf %2, %75 : vector<16x32xf32>
    %c1_28 = arith.constant 1 : index
    %c0_29 = arith.constant 0 : index
    %c0_30 = arith.constant 0 : index
    %77 = vector.load %arg3[%c1_28, %c0_29, %c0_30] : memref<5x2x32xf32, #tpu.memory_space<vmem>>, vector<1x1x32xf32>
    %78 = vector.shape_cast %77 : vector<1x1x32xf32> to vector<1x32xf32>
    %c1_31 = arith.constant 1 : index
    %c1_32 = arith.constant 1 : index
    %c0_33 = arith.constant 0 : index
    %79 = vector.load %arg3[%c1_31, %c1_32, %c0_33] : memref<5x2x32xf32, #tpu.memory_space<vmem>>, vector<1x1x32xf32>
    %80 = vector.shape_cast %79 : vector<1x1x32xf32> to vector<1x32xf32>
    %cst_34 = arith.constant dense<0.000000e+00> : vector<16xf32>
    %81 = vector.multi_reduction <add>, %76, %cst_34 [1] : vector<16x32xf32> to vector<16xf32>
    %82 = vector.shape_cast %81 : vector<16xf32> to vector<16x1xf32>
    %cst_35 = arith.constant 3.200000e+01 : f32
    %83 = vector.broadcast %cst_35 : f32 to vector<16x1xf32>
    %84 = arith.divf %82, %83 : vector<16x1xf32>
    %85 = vector.broadcast %84 : vector<16x1xf32> to vector<16x32xf32>
    %86 = arith.subf %76, %85 : vector<16x32xf32>
    %87 = arith.mulf %86, %86 : vector<16x32xf32>
    %cst_36 = arith.constant dense<0.000000e+00> : vector<16xf32>
    %88 = vector.multi_reduction <add>, %87, %cst_36 [1] : vector<16x32xf32> to vector<16xf32>
    %89 = vector.shape_cast %88 : vector<16xf32> to vector<16x1xf32>
    %cst_37 = arith.constant 3.200000e+01 : f32
    %90 = vector.broadcast %cst_37 : f32 to vector<16x1xf32>
    %91 = arith.divf %89, %90 : vector<16x1xf32>
    %92 = vector.broadcast %84 : vector<16x1xf32> to vector<16x32xf32>
    %93 = arith.subf %76, %92 : vector<16x32xf32>
    %cst_38 = arith.constant 9.99999974E-6 : f32
    %94 = vector.broadcast %cst_38 : f32 to vector<16x1xf32>
    %95 = arith.addf %91, %94 : vector<16x1xf32>
    %96 = math.rsqrt %95 : vector<16x1xf32>
    %97 = vector.broadcast %96 : vector<16x1xf32> to vector<16x32xf32>
    %98 = arith.mulf %93, %97 : vector<16x32xf32>
    %99 = vector.broadcast %78 : vector<1x32xf32> to vector<16x32xf32>
    %100 = arith.mulf %98, %99 : vector<16x32xf32>
    %101 = vector.broadcast %80 : vector<1x32xf32> to vector<16x32xf32>
    %102 = arith.addf %100, %101 : vector<16x32xf32>
    %c0_39 = arith.constant 0 : index
    %c0_40 = arith.constant 0 : index
    %c0_41 = arith.constant 0 : index
    %103 = vector.load %arg8[%c0_39, %c0_40, %c0_41] : memref<4x32x32xf32, #tpu.memory_space<vmem>>, vector<1x32x32xf32>
    %104 = vector.shape_cast %103 : vector<1x32x32xf32> to vector<32x32xf32>
    %cst_42 = arith.constant dense<0.000000e+00> : vector<16x32xf32>
    %105 = tpu.matmul %102, %104, %cst_42 {dimension_numbers = #tpu.dot_dimension_numbers<[1], [0], [0], [1], [0, 0, 1, 1], [], []>} : vector<16x32xf32>, vector<32x32xf32>, vector<16x32xf32> -> vector<16x32xf32>
    %c0_43 = arith.constant 0 : index
    %c0_44 = arith.constant 0 : index
    %106 = vector.load %arg9[%c0_43, %c0_44] : memref<4x32xf32, #tpu.memory_space<vmem>>, vector<1x32xf32>
    %107 = vector.broadcast %106 : vector<1x32xf32> to vector<16x32xf32>
    %108 = arith.addf %105, %107 : vector<16x32xf32>
    %c1_45 = arith.constant 1 : index
    %c0_46 = arith.constant 0 : index
    %c0_47 = arith.constant 0 : index
    %109 = vector.load %arg8[%c1_45, %c0_46, %c0_47] : memref<4x32x32xf32, #tpu.memory_space<vmem>>, vector<1x32x32xf32>
    %110 = vector.shape_cast %109 : vector<1x32x32xf32> to vector<32x32xf32>
    %cst_48 = arith.constant dense<0.000000e+00> : vector<16x32xf32>
    %111 = tpu.matmul %102, %110, %cst_48 {dimension_numbers = #tpu.dot_dimension_numbers<[1], [0], [0], [1], [0, 0, 1, 1], [], []>} : vector<16x32xf32>, vector<32x32xf32>, vector<16x32xf32> -> vector<16x32xf32>
    %c1_49 = arith.constant 1 : index
    %c0_50 = arith.constant 0 : index
    %112 = vector.load %arg9[%c1_49, %c0_50] : memref<4x32xf32, #tpu.memory_space<vmem>>, vector<1x32xf32>
    %113 = vector.broadcast %112 : vector<1x32xf32> to vector<16x32xf32>
    %114 = arith.addf %111, %113 : vector<16x32xf32>
    %c2 = arith.constant 2 : index
    %c0_51 = arith.constant 0 : index
    %c0_52 = arith.constant 0 : index
    %115 = vector.load %arg8[%c2, %c0_51, %c0_52] : memref<4x32x32xf32, #tpu.memory_space<vmem>>, vector<1x32x32xf32>
    %116 = vector.shape_cast %115 : vector<1x32x32xf32> to vector<32x32xf32>
    %cst_53 = arith.constant dense<0.000000e+00> : vector<16x32xf32>
    %117 = tpu.matmul %102, %116, %cst_53 {dimension_numbers = #tpu.dot_dimension_numbers<[1], [0], [0], [1], [0, 0, 1, 1], [], []>} : vector<16x32xf32>, vector<32x32xf32>, vector<16x32xf32> -> vector<16x32xf32>
    %c2_54 = arith.constant 2 : index
    %c0_55 = arith.constant 0 : index
    %118 = vector.load %arg9[%c2_54, %c0_55] : memref<4x32xf32, #tpu.memory_space<vmem>>, vector<1x32xf32>
    %119 = vector.broadcast %118 : vector<1x32xf32> to vector<16x32xf32>
    %120 = arith.addf %117, %119 : vector<16x32xf32>
    %121 = vector.shape_cast %114 : vector<16x32xf32> to vector<2x8x32xf32>
    %c0_56 = arith.constant 0 : index
    %c0_57 = arith.constant 0 : index
    %c0_58 = arith.constant 0 : index
    %122 = vector.load %arg17[%c0_56, %c0_57, %c0_58] : memref<2x8x32xf32, #tpu.memory_space<vmem>>, vector<2x8x32xf32>
    tpu.vector_store %arg17[%c0_56, %c0_57, %c0_58], %121 {strides = array<i32>} : memref<2x8x32xf32, #tpu.memory_space<vmem>>, vector<2x8x32xf32>,
    %123 = vector.shape_cast %120 : vector<16x32xf32> to vector<2x8x32xf32>
    %c0_59 = arith.constant 0 : index
    %c0_60 = arith.constant 0 : index
    %c0_61 = arith.constant 0 : index
    %124 = vector.load %arg18[%c0_59, %c0_60, %c0_61] : memref<2x8x32xf32, #tpu.memory_space<vmem>>, vector<2x8x32xf32>
    tpu.vector_store %arg18[%c0_59, %c0_60, %c0_61], %123 {strides = array<i32>} : memref<2x8x32xf32, #tpu.memory_space<vmem>>, vector<2x8x32xf32>,
    %125 = vector.shape_cast %108 : vector<16x32xf32> to vector<2x8x32xf32>
    %126 = vector.shape_cast %114 : vector<16x32xf32> to vector<2x8x32xf32>
    %127 = vector.shape_cast %120 : vector<16x32xf32> to vector<2x8x32xf32>
    %128 = vector.extract_strided_slice %125 {offsets = [0, 0, 0], sizes = [2, 8, 8], strides = [1, 1, 1]} : vector<2x8x32xf32> to vector<2x8x8xf32>
    %129 = vector.extract_strided_slice %126 {offsets = [0, 0, 0], sizes = [2, 8, 8], strides = [1, 1, 1]} : vector<2x8x32xf32> to vector<2x8x8xf32>
    "tpu.trace_start"() <{level = 10 : i32, message = "btd,bsd->bts"}> : () -> ()
    %cst_62 = arith.constant dense<0.000000e+00> : vector<2x8x8xf32>
    %130 = tpu.matmul %128, %129, %cst_62 {dimension_numbers = #tpu.dot_dimension_numbers<[2], [2], [1], [1], [0, 0, 0, 1, 1, 1], [0], [0]>} : vector<2x8x8xf32>, vector<2x8x8xf32>, vector<2x8x8xf32> -> vector<2x8x8xf32>
    "tpu.trace_stop"() : () -> ()
    %cst_63 = arith.constant 0.353553385 : f32
    %131 = vector.broadcast %cst_63 : f32 to vector<2x8x8xf32>
    %132 = arith.mulf %130, %131 : vector<2x8x8xf32>
    %133 = vector.broadcast %27 : vector<2x1x8xf32> to vector<2x8x8xf32>
    %134 = arith.addf %132, %133 : vector<2x8x8xf32>
    %cst_64 = arith.constant dense<0xFF800000> : vector<2x8xf32>
    %135 = vector.multi_reduction <maximumf>, %134, %cst_64 [2] : vector<2x8x8xf32> to vector<2x8xf32>
    %136 = vector.shape_cast %135 : vector<2x8xf32> to vector<2x8x1xf32>
    %137 = vector.broadcast %136 : vector<2x8x1xf32> to vector<2x8x8xf32>
    %138 = arith.subf %134, %137 : vector<2x8x8xf32>
    %139 = math.exp %138 : vector<2x8x8xf32>
    %cst_65 = arith.constant dense<0.000000e+00> : vector<2x8xf32>
    %140 = vector.multi_reduction <add>, %139, %cst_65 [2] : vector<2x8x8xf32> to vector<2x8xf32>
    %141 = vector.shape_cast %140 : vector<2x8xf32> to vector<2x8x1xf32>
    %142 = tpu.reciprocal %141 {approx = true} : vector<2x8x1xf32> -> vector<2x8x1xf32>
    %143 = vector.broadcast %142 : vector<2x8x1xf32> to vector<2x8x8xf32>
    %144 = arith.mulf %139, %143 : vector<2x8x8xf32>
    %cst_66 = arith.constant 0.000000e+00 : f32
    %145 = vector.broadcast %cst_66 : f32 to vector<2x8x8xf32>
    %146 = arith.select %30, %144, %145 : vector<2x8x8xi1>, vector<2x8x8xf32>
    %147 = vector.extract_strided_slice %127 {offsets = [0, 0, 0], sizes = [2, 8, 8], strides = [1, 1, 1]} : vector<2x8x32xf32> to vector<2x8x8xf32>
    "tpu.trace_start"() <{level = 10 : i32, message = "bts,bsd->btd"}> : () -> ()
    %cst_67 = arith.constant dense<0.000000e+00> : vector<2x8x8xf32>
    %148 = tpu.matmul %146, %147, %cst_67 {dimension_numbers = #tpu.dot_dimension_numbers<[2], [1], [1], [2], [0, 0, 0, 1, 1, 2], [0], [0]>} : vector<2x8x8xf32>, vector<2x8x8xf32>, vector<2x8x8xf32> -> vector<2x8x8xf32>
    "tpu.trace_stop"() : () -> ()
    %149 = vector.extract_strided_slice %125 {offsets = [0, 0, 8], sizes = [2, 8, 8], strides = [1, 1, 1]} : vector<2x8x32xf32> to vector<2x8x8xf32>
    %150 = vector.extract_strided_slice %126 {offsets = [0, 0, 8], sizes = [2, 8, 8], strides = [1, 1, 1]} : vector<2x8x32xf32> to vector<2x8x8xf32>
    "tpu.trace_start"() <{level = 10 : i32, message = "btd,bsd->bts"}> : () -> ()
    %cst_68 = arith.constant dense<0.000000e+00> : vector<2x8x8xf32>
    %151 = tpu.matmul %149, %150, %cst_68 {dimension_numbers = #tpu.dot_dimension_numbers<[2], [2], [1], [1], [0, 0, 0, 1, 1, 1], [0], [0]>} : vector<2x8x8xf32>, vector<2x8x8xf32>, vector<2x8x8xf32> -> vector<2x8x8xf32>
    "tpu.trace_stop"() : () -> ()
    %cst_69 = arith.constant 0.353553385 : f32
    %152 = vector.broadcast %cst_69 : f32 to vector<2x8x8xf32>
    %153 = arith.mulf %151, %152 : vector<2x8x8xf32>
    %154 = vector.broadcast %27 : vector<2x1x8xf32> to vector<2x8x8xf32>
    %155 = arith.addf %153, %154 : vector<2x8x8xf32>
    %cst_70 = arith.constant dense<0xFF800000> : vector<2x8xf32>
    %156 = vector.multi_reduction <maximumf>, %155, %cst_70 [2] : vector<2x8x8xf32> to vector<2x8xf32>
    %157 = vector.shape_cast %156 : vector<2x8xf32> to vector<2x8x1xf32>
    %158 = vector.broadcast %157 : vector<2x8x1xf32> to vector<2x8x8xf32>
    %159 = arith.subf %155, %158 : vector<2x8x8xf32>
    %160 = math.exp %159 : vector<2x8x8xf32>
    %cst_71 = arith.constant dense<0.000000e+00> : vector<2x8xf32>
    %161 = vector.multi_reduction <add>, %160, %cst_71 [2] : vector<2x8x8xf32> to vector<2x8xf32>
    %162 = vector.shape_cast %161 : vector<2x8xf32> to vector<2x8x1xf32>
    %163 = tpu.reciprocal %162 {approx = true} : vector<2x8x1xf32> -> vector<2x8x1xf32>
    %164 = vector.broadcast %163 : vector<2x8x1xf32> to vector<2x8x8xf32>
    %165 = arith.mulf %160, %164 : vector<2x8x8xf32>
    %cst_72 = arith.constant 0.000000e+00 : f32
    %166 = vector.broadcast %cst_72 : f32 to vector<2x8x8xf32>
    %167 = arith.select %30, %165, %166 : vector<2x8x8xi1>, vector<2x8x8xf32>
    %168 = vector.extract_strided_slice %127 {offsets = [0, 0, 8], sizes = [2, 8, 8], strides = [1, 1, 1]} : vector<2x8x32xf32> to vector<2x8x8xf32>
    "tpu.trace_start"() <{level = 10 : i32, message = "bts,bsd->btd"}> : () -> ()
    %cst_73 = arith.constant dense<0.000000e+00> : vector<2x8x8xf32>
    %169 = tpu.matmul %167, %168, %cst_73 {dimension_numbers = #tpu.dot_dimension_numbers<[2], [1], [1], [2], [0, 0, 0, 1, 1, 2], [0], [0]>} : vector<2x8x8xf32>, vector<2x8x8xf32>, vector<2x8x8xf32> -> vector<2x8x8xf32>
    "tpu.trace_stop"() : () -> ()
    %170 = vector.extract_strided_slice %125 {offsets = [0, 0, 16], sizes = [2, 8, 8], strides = [1, 1, 1]} : vector<2x8x32xf32> to vector<2x8x8xf32>
    %171 = vector.extract_strided_slice %126 {offsets = [0, 0, 16], sizes = [2, 8, 8], strides = [1, 1, 1]} : vector<2x8x32xf32> to vector<2x8x8xf32>
    "tpu.trace_start"() <{level = 10 : i32, message = "btd,bsd->bts"}> : () -> ()
    %cst_74 = arith.constant dense<0.000000e+00> : vector<2x8x8xf32>
    %172 = tpu.matmul %170, %171, %cst_74 {dimension_numbers = #tpu.dot_dimension_numbers<[2], [2], [1], [1], [0, 0, 0, 1, 1, 1], [0], [0]>} : vector<2x8x8xf32>, vector<2x8x8xf32>, vector<2x8x8xf32> -> vector<2x8x8xf32>
    "tpu.trace_stop"() : () -> ()
    %cst_75 = arith.constant 0.353553385 : f32
    %173 = vector.broadcast %cst_75 : f32 to vector<2x8x8xf32>
    %174 = arith.mulf %172, %173 : vector<2x8x8xf32>
    %175 = vector.broadcast %27 : vector<2x1x8xf32> to vector<2x8x8xf32>
    %176 = arith.addf %174, %175 : vector<2x8x8xf32>
    %cst_76 = arith.constant dense<0xFF800000> : vector<2x8xf32>
    %177 = vector.multi_reduction <maximumf>, %176, %cst_76 [2] : vector<2x8x8xf32> to vector<2x8xf32>
    %178 = vector.shape_cast %177 : vector<2x8xf32> to vector<2x8x1xf32>
    %179 = vector.broadcast %178 : vector<2x8x1xf32> to vector<2x8x8xf32>
    %180 = arith.subf %176, %179 : vector<2x8x8xf32>
    %181 = math.exp %180 : vector<2x8x8xf32>
    %cst_77 = arith.constant dense<0.000000e+00> : vector<2x8xf32>
    %182 = vector.multi_reduction <add>, %181, %cst_77 [2] : vector<2x8x8xf32> to vector<2x8xf32>
    %183 = vector.shape_cast %182 : vector<2x8xf32> to vector<2x8x1xf32>
    %184 = tpu.reciprocal %183 {approx = true} : vector<2x8x1xf32> -> vector<2x8x1xf32>
    %185 = vector.broadcast %184 : vector<2x8x1xf32> to vector<2x8x8xf32>
    %186 = arith.mulf %181, %185 : vector<2x8x8xf32>
    %cst_78 = arith.constant 0.000000e+00 : f32
    %187 = vector.broadcast %cst_78 : f32 to vector<2x8x8xf32>
    %188 = arith.select %30, %186, %187 : vector<2x8x8xi1>, vector<2x8x8xf32>
    %189 = vector.extract_strided_slice %127 {offsets = [0, 0, 16], sizes = [2, 8, 8], strides = [1, 1, 1]} : vector<2x8x32xf32> to vector<2x8x8xf32>
    "tpu.trace_start"() <{level = 10 : i32, message = "bts,bsd->btd"}> : () -> ()
    %cst_79 = arith.constant dense<0.000000e+00> : vector<2x8x8xf32>
    %190 = tpu.matmul %188, %189, %cst_79 {dimension_numbers = #tpu.dot_dimension_numbers<[2], [1], [1], [2], [0, 0, 0, 1, 1, 2], [0], [0]>} : vector<2x8x8xf32>, vector<2x8x8xf32>, vector<2x8x8xf32> -> vector<2x8x8xf32>
    "tpu.trace_stop"() : () -> ()
    %191 = vector.extract_strided_slice %125 {offsets = [0, 0, 24], sizes = [2, 8, 8], strides = [1, 1, 1]} : vector<2x8x32xf32> to vector<2x8x8xf32>
    %192 = vector.extract_strided_slice %126 {offsets = [0, 0, 24], sizes = [2, 8, 8], strides = [1, 1, 1]} : vector<2x8x32xf32> to vector<2x8x8xf32>
    "tpu.trace_start"() <{level = 10 : i32, message = "btd,bsd->bts"}> : () -> ()
    %cst_80 = arith.constant dense<0.000000e+00> : vector<2x8x8xf32>
    %193 = tpu.matmul %191, %192, %cst_80 {dimension_numbers = #tpu.dot_dimension_numbers<[2], [2], [1], [1], [0, 0, 0, 1, 1, 1], [0], [0]>} : vector<2x8x8xf32>, vector<2x8x8xf32>, vector<2x8x8xf32> -> vector<2x8x8xf32>
    "tpu.trace_stop"() : () -> ()
    %cst_81 = arith.constant 0.353553385 : f32
    %194 = vector.broadcast %cst_81 : f32 to vector<2x8x8xf32>
    %195 = arith.mulf %193, %194 : vector<2x8x8xf32>
    %196 = vector.broadcast %27 : vector<2x1x8xf32> to vector<2x8x8xf32>
    %197 = arith.addf %195, %196 : vector<2x8x8xf32>
    %cst_82 = arith.constant dense<0xFF800000> : vector<2x8xf32>
    %198 = vector.multi_reduction <maximumf>, %197, %cst_82 [2] : vector<2x8x8xf32> to vector<2x8xf32>
    %199 = vector.shape_cast %198 : vector<2x8xf32> to vector<2x8x1xf32>
    %200 = vector.broadcast %199 : vector<2x8x1xf32> to vector<2x8x8xf32>
    %201 = arith.subf %197, %200 : vector<2x8x8xf32>
    %202 = math.exp %201 : vector<2x8x8xf32>
    %cst_83 = arith.constant dense<0.000000e+00> : vector<2x8xf32>
    %203 = vector.multi_reduction <add>, %202, %cst_83 [2] : vector<2x8x8xf32> to vector<2x8xf32>
    %204 = vector.shape_cast %203 : vector<2x8xf32> to vector<2x8x1xf32>
    %205 = tpu.reciprocal %204 {approx = true} : vector<2x8x1xf32> -> vector<2x8x1xf32>
    %206 = vector.broadcast %205 : vector<2x8x1xf32> to vector<2x8x8xf32>
    %207 = arith.mulf %202, %206 : vector<2x8x8xf32>
    %cst_84 = arith.constant 0.000000e+00 : f32
    %208 = vector.broadcast %cst_84 : f32 to vector<2x8x8xf32>
    %209 = arith.select %30, %207, %208 : vector<2x8x8xi1>, vector<2x8x8xf32>
    %210 = vector.extract_strided_slice %127 {offsets = [0, 0, 24], sizes = [2, 8, 8], strides = [1, 1, 1]} : vector<2x8x32xf32> to vector<2x8x8xf32>
    "tpu.trace_start"() <{level = 10 : i32, message = "bts,bsd->btd"}> : () -> ()
    %cst_85 = arith.constant dense<0.000000e+00> : vector<2x8x8xf32>
    %211 = tpu.matmul %209, %210, %cst_85 {dimension_numbers = #tpu.dot_dimension_numbers<[2], [1], [1], [2], [0, 0, 0, 1, 1, 2], [0], [0]>} : vector<2x8x8xf32>, vector<2x8x8xf32>, vector<2x8x8xf32> -> vector<2x8x8xf32>
    "tpu.trace_stop"() : () -> ()
    %212 = tpu.concatenate %148, %169, %190, %211 in 2 : vector<2x8x8xf32>, vector<2x8x8xf32>, vector<2x8x8xf32>, vector<2x8x8xf32> -> vector<2x8x32xf32>
    %213 = vector.shape_cast %212 : vector<2x8x32xf32> to vector<16x32xf32>
    %c3 = arith.constant 3 : index
    %c0_86 = arith.constant 0 : index
    %c0_87 = arith.constant 0 : index
    %214 = vector.load %arg8[%c3, %c0_86, %c0_87] : memref<4x32x32xf32, #tpu.memory_space<vmem>>, vector<1x32x32xf32>
    %215 = vector.shape_cast %214 : vector<1x32x32xf32> to vector<32x32xf32>
    %cst_88 = arith.constant dense<0.000000e+00> : vector<16x32xf32>
    %216 = tpu.matmul %213, %215, %cst_88 {dimension_numbers = #tpu.dot_dimension_numbers<[1], [0], [0], [1], [0, 0, 1, 1], [], []>} : vector<16x32xf32>, vector<32x32xf32>, vector<16x32xf32> -> vector<16x32xf32>
    %217 = arith.addf %76, %216 : vector<16x32xf32>
    %c3_89 = arith.constant 3 : index
    %c0_90 = arith.constant 0 : index
    %218 = vector.load %arg9[%c3_89, %c0_90] : memref<4x32xf32, #tpu.memory_space<vmem>>, vector<1x32xf32>
    %219 = vector.broadcast %218 : vector<1x32xf32> to vector<16x32xf32>
    %220 = arith.addf %217, %219 : vector<16x32xf32>
    %c2_91 = arith.constant 2 : index
    %c0_92 = arith.constant 0 : index
    %c0_93 = arith.constant 0 : index
    %221 = vector.load %arg3[%c2_91, %c0_92, %c0_93] : memref<5x2x32xf32, #tpu.memory_space<vmem>>, vector<1x1x32xf32>
    %222 = vector.shape_cast %221 : vector<1x1x32xf32> to vector<1x32xf32>
    %c2_94 = arith.constant 2 : index
    %c1_95 = arith.constant 1 : index
    %c0_96 = arith.constant 0 : index
    %223 = vector.load %arg3[%c2_94, %c1_95, %c0_96] : memref<5x2x32xf32, #tpu.memory_space<vmem>>, vector<1x1x32xf32>
    %224 = vector.shape_cast %223 : vector<1x1x32xf32> to vector<1x32xf32>
    %cst_97 = arith.constant dense<0.000000e+00> : vector<16xf32>
    %225 = vector.multi_reduction <add>, %220, %cst_97 [1] : vector<16x32xf32> to vector<16xf32>
    %226 = vector.shape_cast %225 : vector<16xf32> to vector<16x1xf32>
    %cst_98 = arith.constant 3.200000e+01 : f32
    %227 = vector.broadcast %cst_98 : f32 to vector<16x1xf32>
    %228 = arith.divf %226, %227 : vector<16x1xf32>
    %229 = vector.broadcast %228 : vector<16x1xf32> to vector<16x32xf32>
    %230 = arith.subf %220, %229 : vector<16x32xf32>
    %231 = arith.mulf %230, %230 : vector<16x32xf32>
    %cst_99 = arith.constant dense<0.000000e+00> : vector<16xf32>
    %232 = vector.multi_reduction <add>, %231, %cst_99 [1] : vector<16x32xf32> to vector<16xf32>
    %233 = vector.shape_cast %232 : vector<16xf32> to vector<16x1xf32>
    %cst_100 = arith.constant 3.200000e+01 : f32
    %234 = vector.broadcast %cst_100 : f32 to vector<16x1xf32>
    %235 = arith.divf %233, %234 : vector<16x1xf32>
    %236 = vector.broadcast %228 : vector<16x1xf32> to vector<16x32xf32>
    %237 = arith.subf %220, %236 : vector<16x32xf32>
    %cst_101 = arith.constant 9.99999974E-6 : f32
    %238 = vector.broadcast %cst_101 : f32 to vector<16x1xf32>
    %239 = arith.addf %235, %238 : vector<16x1xf32>
    %240 = math.rsqrt %239 : vector<16x1xf32>
    %241 = vector.broadcast %240 : vector<16x1xf32> to vector<16x32xf32>
    %242 = arith.mulf %237, %241 : vector<16x32xf32>
    %243 = vector.broadcast %222 : vector<1x32xf32> to vector<16x32xf32>
    %244 = arith.mulf %242, %243 : vector<16x32xf32>
    %245 = vector.broadcast %224 : vector<1x32xf32> to vector<16x32xf32>
    %246 = arith.addf %244, %245 : vector<16x32xf32>
    %247 = vector.broadcast %33 : vector<16x1xf32> to vector<16x32xf32>
    %248 = arith.mulf %246, %247 : vector<16x32xf32>
    %c0_i32_102 = arith.constant 0 : i32
    %249 = vector.broadcast %c0_i32_102 : i32 to vector<16x1xi32>
    %250 = arith.cmpi eq, %35, %249 : vector<16x1xi32>
    %c1_i32_103 = arith.constant 1 : i32
    %251 = tpu.dynamic_rotate %248 by %c1_i32_103 dim 0 : vector<16x32xf32>, i32 -> vector<16x32xf32>
    %cst_104 = arith.constant 0.000000e+00 : f32
    %252 = vector.shape_cast %250 : vector<16x1xi1> to vector<16x1xi1>
    %253 = vector.broadcast %252 : vector<16x1xi1> to vector<16x32xi1>
    %254 = vector.broadcast %cst_104 : f32 to vector<16x32xf32>
    %255 = arith.select %253, %254, %251 : vector<16x32xi1>, vector<16x32xf32>
    %c7_i32 = arith.constant 7 : i32
    %256 = vector.broadcast %c7_i32 : i32 to vector<16x1xi32>
    %257 = arith.cmpi eq, %35, %256 : vector<16x1xi32>
    %c15_i32 = arith.constant 15 : i32
    %258 = tpu.dynamic_rotate %248 by %c15_i32 dim 0 : vector<16x32xf32>, i32 -> vector<16x32xf32>
    %cst_105 = arith.constant 0.000000e+00 : f32
    %259 = vector.shape_cast %257 : vector<16x1xi1> to vector<16x1xi1>
    %260 = vector.broadcast %259 : vector<16x1xi1> to vector<16x32xi1>
    %261 = vector.broadcast %cst_105 : f32 to vector<16x32xf32>
    %262 = arith.select %260, %261, %258 : vector<16x32xi1>, vector<16x32xf32>
    %263 = tpu.concatenate %255, %248, %262 in 1 : vector<16x32xf32>, vector<16x32xf32>, vector<16x32xf32> -> vector<16x96xf32>
    %c0_106 = arith.constant 0 : index
    %c0_107 = arith.constant 0 : index
    %264 = vector.load %arg10[%c0_106, %c0_107] : memref<96x32xf32, #tpu.memory_space<vmem>>, vector<96x32xf32>
    %cst_108 = arith.constant dense<0.000000e+00> : vector<16x32xf32>
    %265 = tpu.matmul %263, %264, %cst_108 {dimension_numbers = #tpu.dot_dimension_numbers<[1], [0], [0], [1], [0, 0, 1, 1], [], []>} : vector<16x96xf32>, vector<96x32xf32>, vector<16x32xf32> -> vector<16x32xf32>
    %c0_109 = arith.constant 0 : index
    %c0_110 = arith.constant 0 : index
    %266 = vector.load %arg11[%c0_109, %c0_110] : memref<1x32xf32, #tpu.memory_space<vmem>>, vector<1x32xf32>
    %267 = vector.broadcast %266 : vector<1x32xf32> to vector<16x32xf32>
    %268 = arith.addf %265, %267 : vector<16x32xf32>
    %cst_111 = arith.constant 0.000000e+00 : f32
    %269 = vector.broadcast %cst_111 : f32 to vector<16x32xf32>
    %270 = arith.maximumf %268, %269 : vector<16x32xf32>
    %271 = vector.broadcast %33 : vector<16x1xf32> to vector<16x32xf32>
    %272 = arith.mulf %270, %271 : vector<16x32xf32>
    %273 = arith.addf %220, %272 : vector<16x32xf32>
    %c3_112 = arith.constant 3 : index
    %c0_113 = arith.constant 0 : index
    %c0_114 = arith.constant 0 : index
    %274 = vector.load %arg3[%c3_112, %c0_113, %c0_114] : memref<5x2x32xf32, #tpu.memory_space<vmem>>, vector<1x1x32xf32>
    %275 = vector.shape_cast %274 : vector<1x1x32xf32> to vector<1x32xf32>
    %c3_115 = arith.constant 3 : index
    %c1_116 = arith.constant 1 : index
    %c0_117 = arith.constant 0 : index
    %276 = vector.load %arg3[%c3_115, %c1_116, %c0_117] : memref<5x2x32xf32, #tpu.memory_space<vmem>>, vector<1x1x32xf32>
    %277 = vector.shape_cast %276 : vector<1x1x32xf32> to vector<1x32xf32>
    %cst_118 = arith.constant dense<0.000000e+00> : vector<16xf32>
    %278 = vector.multi_reduction <add>, %273, %cst_118 [1] : vector<16x32xf32> to vector<16xf32>
    %279 = vector.shape_cast %278 : vector<16xf32> to vector<16x1xf32>
    %cst_119 = arith.constant 3.200000e+01 : f32
    %280 = vector.broadcast %cst_119 : f32 to vector<16x1xf32>
    %281 = arith.divf %279, %280 : vector<16x1xf32>
    %282 = vector.broadcast %281 : vector<16x1xf32> to vector<16x32xf32>
    %283 = arith.subf %273, %282 : vector<16x32xf32>
    %284 = arith.mulf %283, %283 : vector<16x32xf32>
    %cst_120 = arith.constant dense<0.000000e+00> : vector<16xf32>
    %285 = vector.multi_reduction <add>, %284, %cst_120 [1] : vector<16x32xf32> to vector<16xf32>
    %286 = vector.shape_cast %285 : vector<16xf32> to vector<16x1xf32>
    %cst_121 = arith.constant 3.200000e+01 : f32
    %287 = vector.broadcast %cst_121 : f32 to vector<16x1xf32>
    %288 = arith.divf %286, %287 : vector<16x1xf32>
    %289 = vector.broadcast %281 : vector<16x1xf32> to vector<16x32xf32>
    %290 = arith.subf %273, %289 : vector<16x32xf32>
    %cst_122 = arith.constant 9.99999974E-6 : f32
    %291 = vector.broadcast %cst_122 : f32 to vector<16x1xf32>
    %292 = arith.addf %288, %291 : vector<16x1xf32>
    %293 = math.rsqrt %292 : vector<16x1xf32>
    %294 = vector.broadcast %293 : vector<16x1xf32> to vector<16x32xf32>
    %295 = arith.mulf %290, %294 : vector<16x32xf32>
    %296 = vector.broadcast %275 : vector<1x32xf32> to vector<16x32xf32>
    %297 = arith.mulf %295, %296 : vector<16x32xf32>
    %298 = vector.broadcast %277 : vector<1x32xf32> to vector<16x32xf32>
    %299 = arith.addf %297, %298 : vector<16x32xf32>
    %c0_123 = arith.constant 0 : index
    %c0_124 = arith.constant 0 : index
    %300 = vector.load %arg12[%c0_123, %c0_124] : memref<32x64xf32, #tpu.memory_space<vmem>>, vector<32x64xf32>
    %c0_125 = arith.constant 0 : index
    %c0_126 = arith.constant 0 : index
    %301 = vector.load %arg13[%c0_125, %c0_126] : memref<1x64xf32, #tpu.memory_space<vmem>>, vector<1x64xf32>
    %c0_127 = arith.constant 0 : index
    %c0_128 = arith.constant 0 : index
    %302 = vector.load %arg14[%c0_127, %c0_128] : memref<64x32xf32, #tpu.memory_space<vmem>>, vector<64x32xf32>
    %c0_129 = arith.constant 0 : index
    %c0_130 = arith.constant 0 : index
    %303 = vector.load %arg15[%c0_129, %c0_130] : memref<1x32xf32, #tpu.memory_space<vmem>>, vector<1x32xf32>
    %cst_131 = arith.constant dense<0.000000e+00> : vector<16x64xf32>
    %304 = tpu.matmul %299, %300, %cst_131 {dimension_numbers = #tpu.dot_dimension_numbers<[1], [0], [0], [1], [0, 0, 1, 1], [], []>} : vector<16x32xf32>, vector<32x64xf32>, vector<16x64xf32> -> vector<16x64xf32>
    %305 = vector.broadcast %301 : vector<1x64xf32> to vector<16x64xf32>
    %306 = arith.addf %304, %305 : vector<16x64xf32>
    %cst_132 = arith.constant 0.000000e+00 : f32
    %307 = vector.broadcast %cst_132 : f32 to vector<16x64xf32>
    %308 = arith.maximumf %306, %307 : vector<16x64xf32>
    %cst_133 = arith.constant dense<0.000000e+00> : vector<16x32xf32>
    %309 = tpu.matmul %308, %302, %cst_133 {dimension_numbers = #tpu.dot_dimension_numbers<[1], [0], [0], [1], [0, 0, 1, 1], [], []>} : vector<16x64xf32>, vector<64x32xf32>, vector<16x32xf32> -> vector<16x32xf32>
    %310 = vector.broadcast %303 : vector<1x32xf32> to vector<16x32xf32>
    %311 = arith.addf %309, %310 : vector<16x32xf32>
    %cst_134 = arith.constant 5.000000e-01 : f32
    %312 = vector.broadcast %cst_134 : f32 to vector<16x32xf32>
    %313 = arith.mulf %312, %311 : vector<16x32xf32>
    %314 = arith.addf %273, %313 : vector<16x32xf32>
    %c4 = arith.constant 4 : index
    %c0_135 = arith.constant 0 : index
    %c0_136 = arith.constant 0 : index
    %315 = vector.load %arg3[%c4, %c0_135, %c0_136] : memref<5x2x32xf32, #tpu.memory_space<vmem>>, vector<1x1x32xf32>
    %316 = vector.shape_cast %315 : vector<1x1x32xf32> to vector<1x32xf32>
    %c4_137 = arith.constant 4 : index
    %c1_138 = arith.constant 1 : index
    %c0_139 = arith.constant 0 : index
    %317 = vector.load %arg3[%c4_137, %c1_138, %c0_139] : memref<5x2x32xf32, #tpu.memory_space<vmem>>, vector<1x1x32xf32>
    %318 = vector.shape_cast %317 : vector<1x1x32xf32> to vector<1x32xf32>
    %cst_140 = arith.constant dense<0.000000e+00> : vector<16xf32>
    %319 = vector.multi_reduction <add>, %314, %cst_140 [1] : vector<16x32xf32> to vector<16xf32>
    %320 = vector.shape_cast %319 : vector<16xf32> to vector<16x1xf32>
    %cst_141 = arith.constant 3.200000e+01 : f32
    %321 = vector.broadcast %cst_141 : f32 to vector<16x1xf32>
    %322 = arith.divf %320, %321 : vector<16x1xf32>
    %323 = vector.broadcast %322 : vector<16x1xf32> to vector<16x32xf32>
    %324 = arith.subf %314, %323 : vector<16x32xf32>
    %325 = arith.mulf %324, %324 : vector<16x32xf32>
    %cst_142 = arith.constant dense<0.000000e+00> : vector<16xf32>
    %326 = vector.multi_reduction <add>, %325, %cst_142 [1] : vector<16x32xf32> to vector<16xf32>
    %327 = vector.shape_cast %326 : vector<16xf32> to vector<16x1xf32>
    %cst_143 = arith.constant 3.200000e+01 : f32
    %328 = vector.broadcast %cst_143 : f32 to vector<16x1xf32>
    %329 = arith.divf %327, %328 : vector<16x1xf32>
    %330 = vector.broadcast %322 : vector<16x1xf32> to vector<16x32xf32>
    %331 = arith.subf %314, %330 : vector<16x32xf32>
    %cst_144 = arith.constant 9.99999974E-6 : f32
    %332 = vector.broadcast %cst_144 : f32 to vector<16x1xf32>
    %333 = arith.addf %329, %332 : vector<16x1xf32>
    %334 = math.rsqrt %333 : vector<16x1xf32>
    %335 = vector.broadcast %334 : vector<16x1xf32> to vector<16x32xf32>
    %336 = arith.mulf %331, %335 : vector<16x32xf32>
    %337 = vector.broadcast %316 : vector<1x32xf32> to vector<16x32xf32>
    %338 = arith.mulf %336, %337 : vector<16x32xf32>
    %339 = vector.broadcast %318 : vector<1x32xf32> to vector<16x32xf32>
    %340 = arith.addf %338, %339 : vector<16x32xf32>
    %341 = vector.shape_cast %340 : vector<16x32xf32> to vector<2x8x32xf32>
    %c0_145 = arith.constant 0 : index
    %c0_146 = arith.constant 0 : index
    %c0_147 = arith.constant 0 : index
    %342 = vector.load %arg16[%c0_145, %c0_146, %c0_147] : memref<2x8x32xf32, #tpu.memory_space<vmem>>, vector<2x8x32xf32>
    tpu.vector_store %arg16[%c0_145, %c0_146, %c0_147], %341 {strides = array<i32>} : memref<2x8x32xf32, #tpu.memory_space<vmem>>, vector<2x8x32xf32>,
    return
  }
  func.func @transform_0(%arg0: i32, %arg1: memref<4xi32, #tpu.memory_space<smem>>) -> (i32, i32, i32) {
    %c0_i32 = arith.constant 0 : i32
    %c0_i32_0 = arith.constant 0 : i32
    %c0_i32_1 = arith.constant 0 : i32
    return %arg0, %c0_i32, %c0_i32_0 : i32, i32, i32
  }
  func.func @transform_1(%arg0: i32, %arg1: memref<4xi32, #tpu.memory_space<smem>>) -> (i32, i32, i32) {
    %c0_i32 = arith.constant 0 : i32
    %c0_i32_0 = arith.constant 0 : i32
    %c0_i32_1 = arith.constant 0 : i32
    %c0_i32_2 = arith.constant 0 : i32
    return %c0_i32, %c0_i32_0, %c0_i32_1 : i32, i32, i32
  }
  func.func @transform_2(%arg0: i32, %arg1: memref<4xi32, #tpu.memory_space<smem>>) -> (i32, i32) {
    %c0_i32 = arith.constant 0 : i32
    %c0_i32_0 = arith.constant 0 : i32
    %c0_i32_1 = arith.constant 0 : i32
    return %c0_i32, %c0_i32_0 : i32, i32
  }
  func.func @transform_3(%arg0: i32, %arg1: memref<4xi32, #tpu.memory_space<smem>>) -> (i32, i32) {
    %c0_i32 = arith.constant 0 : i32
    %c0_i32_0 = arith.constant 0 : i32
    %c0_i32_1 = arith.constant 0 : i32
    return %c0_i32, %c0_i32_0 : i32, i32
  }
  func.func @transform_4(%arg0: i32, %arg1: memref<4xi32, #tpu.memory_space<smem>>) -> (i32, i32) {
    %c0_i32 = arith.constant 0 : i32
    %c0_i32_0 = arith.constant 0 : i32
    %c0_i32_1 = arith.constant 0 : i32
    return %c0_i32, %c0_i32_0 : i32, i32
  }
  func.func @transform_5(%arg0: i32, %arg1: memref<4xi32, #tpu.memory_space<smem>>) -> (i32, i32) {
    %c0_i32 = arith.constant 0 : i32
    %c0_i32_0 = arith.constant 0 : i32
    %c0_i32_1 = arith.constant 0 : i32
    return %c0_i32, %c0_i32_0 : i32, i32
  }
  func.func @transform_6(%arg0: i32, %arg1: memref<4xi32, #tpu.memory_space<smem>>) -> (i32, i32, i32) {
    %c0_i32 = arith.constant 0 : i32
    %c0_i32_0 = arith.constant 0 : i32
    %c0_i32_1 = arith.constant 0 : i32
    %c0_i32_2 = arith.constant 0 : i32
    return %c0_i32, %c0_i32_0, %c0_i32_1 : i32, i32, i32
  }
  func.func @transform_7(%arg0: i32, %arg1: memref<4xi32, #tpu.memory_space<smem>>) -> (i32, i32) {
    %c0_i32 = arith.constant 0 : i32
    %c0_i32_0 = arith.constant 0 : i32
    %c0_i32_1 = arith.constant 0 : i32
    return %c0_i32, %c0_i32_0 : i32, i32
  }
  func.func @transform_8(%arg0: i32, %arg1: memref<4xi32, #tpu.memory_space<smem>>) -> (i32, i32) {
    %c0_i32 = arith.constant 0 : i32
    %c0_i32_0 = arith.constant 0 : i32
    %c0_i32_1 = arith.constant 0 : i32
    return %c0_i32, %c0_i32_0 : i32, i32
  }
  func.func @transform_9(%arg0: i32, %arg1: memref<4xi32, #tpu.memory_space<smem>>) -> (i32, i32) {
    %c0_i32 = arith.constant 0 : i32
    %c0_i32_0 = arith.constant 0 : i32
    %c0_i32_1 = arith.constant 0 : i32
    return %c0_i32, %c0_i32_0 : i32, i32
  }
  func.func @transform_10(%arg0: i32, %arg1: memref<4xi32, #tpu.memory_space<smem>>) -> (i32, i32) {
    %c0_i32 = arith.constant 0 : i32
    %c0_i32_0 = arith.constant 0 : i32
    %c0_i32_1 = arith.constant 0 : i32
    return %c0_i32, %c0_i32_0 : i32, i32
  }
  func.func @transform_11(%arg0: i32, %arg1: memref<4xi32, #tpu.memory_space<smem>>) -> (i32, i32) {
    %c0_i32 = arith.constant 0 : i32
    %c0_i32_0 = arith.constant 0 : i32
    %c0_i32_1 = arith.constant 0 : i32
    return %c0_i32, %c0_i32_0 : i32, i32
  }
  func.func @transform_12(%arg0: i32, %arg1: memref<4xi32, #tpu.memory_space<smem>>) -> (i32, i32) {
    %c0_i32 = arith.constant 0 : i32
    %c0_i32_0 = arith.constant 0 : i32
    %c0_i32_1 = arith.constant 0 : i32
    return %c0_i32, %c0_i32_0 : i32, i32
  }
  func.func @transform_13(%arg0: i32, %arg1: memref<4xi32, #tpu.memory_space<smem>>) -> (i32, i32) {
    %c0_i32 = arith.constant 0 : i32
    %c0_i32_0 = arith.constant 0 : i32
    %c0_i32_1 = arith.constant 0 : i32
    return %c0_i32, %c0_i32_0 : i32, i32
  }
  func.func @transform_14(%arg0: i32, %arg1: memref<4xi32, #tpu.memory_space<smem>>) -> (i32, i32, i32) {
    %c0_i32 = arith.constant 0 : i32
    %c0_i32_0 = arith.constant 0 : i32
    %c0_i32_1 = arith.constant 0 : i32
    return %arg0, %c0_i32, %c0_i32_0 : i32, i32, i32
  }
  func.func @transform_15(%arg0: i32, %arg1: memref<4xi32, #tpu.memory_space<smem>>) -> (i32, i32, i32) {
    %c0_i32 = arith.constant 0 : i32
    %c0_i32_0 = arith.constant 0 : i32
    %c0_i32_1 = arith.constant 0 : i32
    return %arg0, %c0_i32, %c0_i32_0 : i32, i32, i32
  }
  func.func @transform_16(%arg0: i32, %arg1: memref<4xi32, #tpu.memory_space<smem>>) -> (i32, i32, i32) {
    %c0_i32 = arith.constant 0 : i32
    %c0_i32_0 = arith.constant 0 : i32
    %c0_i32_1 = arith.constant 0 : i32
    return %arg0, %c0_i32, %c0_i32_0 : i32, i32, i32
  }
}

</mosaic_0001>

<bundles_post_ra>
// kernel: tpu_custom_call.1
= control target key start
LH: loop header
LB: loop body
LE: loop exit
PB: predicated region body
PF: predicated region fallthrough
CT: control target
= control target key end

     0   :  { %s4879_s0 = inlined_call_operand.vmem [shape: s32[4], index: 0, kind: input, shape index: {}]   ;;  %s4880_s1 = inlined_call_operand.vmem [shape: f32[4,8,32], index: 1, kind: input, shape index: {}]   ;;  %s4881_s2 = inlined_call_operand.vmem [shape: f32[5,2,32], index: 2, kind: input, shape index: {}]   ;;  %s4882_s3 = inlined_call_operand.vmem [shape: f32[32,64], index: 3, kind: input, shape index: {}]   ;;  %s4883_s4 = inlined_call_operand.vmem [shape: f32[1,64], index: 4, kind: input, shape index: {}]   ;;  %s4884_s5 = inlined_call_operand.vmem [shape: f32[64,32], index: 5, kind: input, shape index: {}]   ;;  %s4885_s6 = inlined_call_operand.vmem [shape: f32[1,32], index: 6, kind: input, shape index: {}]   ;;  %s4886_s7 = inlined_call_operand.vmem [shape: f32[4,32,32], index: 7, kind: input, shape index: {}]   ;;  %s4887_s8 = inlined_call_operand.vmem [shape: f32[4,32], index: 8, kind: input, shape index: {}]   ;;  %s4888_s9 = inlined_call_operand.vmem [shape: f32[96,32], index: 9, kind: input, shape index: {}]   ;;  %s4889_s10 = inlined_call_operand.vmem [shape: f32[1,32], index: 10, kind: input, shape index: {}]   ;;  %s4890_s11 = inlined_call_operand.vmem [shape: f32[32,64], index: 11, kind: input, shape index: {}]   ;;  %s4891_s12 = inlined_call_operand.vmem [shape: f32[1,64], index: 12, kind: input, shape index: {}]   ;;  %s4892_s13 = inlined_call_operand.vmem [shape: f32[64,32], index: 13, kind: input, shape index: {}]   ;;  %s4893_s14 = inlined_call_operand.vmem [shape: f32[1,32], index: 14, kind: input, shape index: {}]   ;;  %s4894_s15 = inlined_call_operand.hbm [shape: f32[4,8,32], index: 15, kind: output, shape index: {0}]   ;;  %s4895_s16 = inlined_call_operand.hbm [shape: f32[4,8,32], index: 16, kind: output, shape index: {1}]   ;;  %s4896_s17 = inlined_call_operand.hbm [shape: f32[4,8,32], index: 17, kind: output, shape index: {2}]  }
   0x1   :  { %4905 = sst [smem:[#allocation15_spill]] %s4879_s0 }
   0x2   :  { %4906 = sst [smem:[#allocation16_spill]] %s4880_s1  ;;  %s4913_s26 = sld [smem:[#allocation15_spill]] }
   0x3   :  { %4907 = sst [smem:[#allocation17_spill]] %s4882_s3 }
   0x4   :  { %4908 = sst [smem:[#allocation18_spill]] %s4883_s4 }
   0x5   :  { %4909 = sst [smem:[#allocation19_spill]] %s4884_s5 }
   0x6   :  { %4910 = sst [smem:[#allocation20_spill]] %s4885_s6 }
   0x7   :  { %4911 = sst [smem:[#allocation21_spill]] %s4886_s7 }
   0x8   :  { %4912 = sst [smem:[#allocation22_spill]] %s4890_s11  ;;  %s23_s11 = sshll.u32 %s4913_s26, 4  ;;  %s24_s11 = int_to_ptr.vmem [resolvable:$true] %s23_s11 }
   0x9   :  { %s3871_s27 = scalar_lea.vmem %s24_s11, 16  ;;  %p3876_p1 = scmp.lt.s32.totalorder %s24_s11, %s24_s11 }
   0xa   :  { %p3872_p0 = scmp.ne.s32.totalorder %s24_s11, %s3871_s27  ;;  %p3877_p2 = scmp.lt.s32.totalorder %s3871_s27, %s3871_s27 }
   0xc   :  { %p3878_p3 = por %p3877_p2, %p3876_p1 }
   0xe   :  { %p3879_p4 = pnand %p3878_p3, %p3872_p0 }
  0x10   :  { %3882 = shalt.err (!%p3879_p4)  }
  0x11   :  { %s4009_s28 = smov [#allocation3]  }
  0x12   :  { %26 = dma.vmem_to_smem %s24_s11, 16, %s4009_s28, [#allocation2] }
  0x13   :  { %3983 = dma.done.wait [#allocation2], 16 }
  0x14   :  { %3984 = vsyncadd [#allocation2], 4294967280 }
  0x15   :  { %28 = sfence }
  0x16   :  { %29 = vsyncpa [#allocation5], 0 }
  0x17   :  { %31 = vsyncpa [#allocation5 + $0x1], 0 }
  0x18   :  { %32 = vsyncpa [#allocation7], 0 }
  0x19   :  { %34 = vsyncpa [#allocation7 + $0x1], 0  ;;  %s4118_s29 = smov 0   ;;  %s4120_s0 = smov 0  }
  0x1a   :  { %s4122_s30 = smov 0   ;;  %s4124_s18 = smov 0  }
  0x1b LB: > { %4914 = sst [smem:[#allocation12_spill]] %s4003_s30  ;;  %s4139_s11 = sadd.s32 4294967295, %s4007_s18   ;;  %s4007_s18 = sphi %s4124_s18, %s4942_s18   ;;  %s4003_s30 = sphi %s4122_s30, %s4944_s30   ;;  %s3999_s0 = sphi %s4120_s0, %s4946_s0   ;;  %s3995_s29 = sphi %s4118_s29, %s4945_s29  }
  0x1c   : > { %s4898_s19 = sadd.s32 4294967294, %s4007_s18   ;;  %s4143_s1 = sadd.s32 1, %s4007_s18  }
  0x1d   : > { %4915 = sst [smem:[#allocation13_spill]] %s4143_s1  ;;  %s346_s20 = sadd.s32 1, %s4003_s30 }
  0x1e   : > { %s343_s21 = ssub.s32 %s4007_s18, %s4143_s1  ;;  %p356_p5 = scmp.ne.s32.totalorder %s4003_s30, %s3999_s0 }
  0x1f   : > { %p344_p6 = scmp.eq.s32.totalorder %s343_s21, 0  ;;  %p357_p7 = scmp.eq.s32.totalorder %s4139_s11, 1 }
  0x20   : > { %p362_p8 = scmp.ne.s32.totalorder %s3999_s0, %s3995_s29  ;;  %p363_p9 = scmp.eq.s32.totalorder %s4898_s19, 1 }
  0x21   : > { %s4156_s22 = scalar_select %p344_p6, %s4003_s30, %s346_s20  }
  0x22   : > { %p4158_p10 = por %p357_p7, %p356_p5  ;;  %p4162_p11 = por %p363_p9, %p362_p8 }
  0x23   : > { %4916 = sst [smem:[#allocation14_spill]] %s4156_s22  ;;  %p3236_p12 = scmp.ge.s32.totalorder %s4007_s18, 1 }
  0x24   : > { %p481_p13 = scmp.lt.s32.totalorder %s4007_s18, 3 }
  0x26   : > { %p482_p0 = pnand %p3236_p12, %p481_p13 }
  0x27   : > { %s4169_s25 = sshll.u32 (!%p482_p0), %s4139_s11, 1  ;;  %vm582_vm0 = vcmask (!%p482_p0), 261120   ;;  %s4919_s21 = sld [smem:[#allocation16_spill]] (!%p482_p0)  ;;  %v3245_v36 = vld [vmem:[%s4881_s2] ss:$0 sm:$0xff] (!%p482_p0)  ;;  %vm731_vm1 = vcmask (!%p482_p0), 523264  }
  0x28   : > { %485 = sbr.rel (%p482_p0) target bundleno = 5776 (0x1690), region = 76  ;;  %p542_p1 = scmp.lt.s32.totalorder (!%p482_p0), %s4169_s25, 3  ;;  %v3246_v38 = vld [vmem:[%s4881_s2 + $0x1] ss:$0 sm:$0xff] (!%p482_p0)  ;;  %vm4011_vm2 = vmmov (!%p482_p0), 0   ;;  %vm1122_vm3 = vcmask (!%p482_p0), 64512  }
  0x29   : > { %s4920_s3 = sld [smem:[#allocation17_spill]] (!%p482_p0)  ;;  %s4921_s5 = sld [smem:[#allocation19_spill]] (!%p482_p0)  ;;  %vm2488_vm10 = vcmask (!%p482_p0), 195584   ;;  %vm2485_vm11 = vcmask (!%p482_p0), 130048  }
  0x2a   : > { %s4922_s4 = sld [smem:[#allocation18_spill]] (!%p482_p0)  ;;  %s4923_s6 = sld [smem:[#allocation20_spill]] (!%p482_p0) }
  0x2b   : > { %s4924_s7 = sld [smem:[#allocation21_spill]] (!%p482_p0)  ;;  %s555_s28 = sadd.s32 (!%p482_p0), 1, %s4169_s25 }
  0x2c   : > { %s4014_s30 = smov (!%p482_p0), 112   ;;  %s4015_s22 = smov (!%p482_p0), 104  }
  0x2f   : > { %s543_s26 = scalar_select %p542_p1, %s4169_s25, 3  ;;  %v622_v14 = vld [vmem:[%s4920_s3] sm:$0xff]  ;;  %v623_v15 = vld [vmem:[%s4920_s3 + $0x8] sm:$0xff]  ;;  %v624_v16 = vld [vmem:[%s4920_s3 + $0x10] sm:$0xff] }
  0x30   : > { %v3653_v17 = vpack.c.bf16 %v623_v15, %v622_v14  ;;  %v625_v18 = vld [vmem:[%s4920_s3 + $0x18] sm:$0xff]  ;;  %v627_v20 = vld [vmem:[%s4921_s5] sm:$0xff]  ;;  %v628_v21 = vld [vmem:[%s4921_s5 + $0x8] sm:$0xff]  ;;  %s4902_s3 = sand.u32 1, %s3999_s0  }
  0x31   : > { %s3241_s27 = sshll.u32 %s543_s26, 3  ;;  %v3657_v19 = vpack.c.bf16 %v625_v18, %v624_v16  ;;  %v629_v22 = vld [vmem:[%s4921_s5 + $0x10] sm:$0xff]  ;;  %v3661_v23 = vpack.c.bf16 %v628_v21, %v627_v20  ;;  %v630_v24 = vld [vmem:[%s4921_s5 + $0x18] sm:$0xff]  ;;  %v631_v26 = vld [vmem:[%s4921_s5 + $0x20] sm:$0xff]  ;;  %s4311_s1 = sshll.u32 %s4902_s3, 4 }
  0x32   : > { %s545_s19 = scalar_lea.vmem %s4919_s21, %s3241_s27  ;;  %3654 = vmatprep.subr.bf16.mxu0 %v3653_v17  ;;  %v3665_v25 = vpack.c.bf16 %v630_v24, %v629_v22  ;;  %v632_v27 = vld [vmem:[%s4921_s5 + $0x28] sm:$0xff]  ;;  %v633_v45 = vld [vmem:[%s4921_s5 + $0x30] sm:$0xff]  ;;  %v634_v46 = vld [vmem:[%s4921_s5 + $0x38] sm:$0xff]  ;;  %s4321_s20 = scalar_lea.vmem [#allocation8], %s4311_s1 }
  0x33   : > { %v4176_v0 = vld [vmem:[%s545_s19] sm:$0xff]  ;;  %v4178_v1 = vld [vmem:[%s545_s19 + $0x8] sm:$0xff]  ;;  %3656 = vmatpush3.bf16.msra.mxu0 %v3653_v17  ;;  %3662 = vmatprep.subr.bf16.mxu1 %v3661_v23  ;;  %v3669_v28 = vpack.c.bf16 %v632_v27, %v631_v26  ;;  %v3673_v47 = vpack.c.bf16 %v634_v46, %v633_v45  ;;  %v860_v18 = vld [vmem:[%s4924_s7 + $0x10] sm:$0xff]  ;;  %v4010_v46 = vmov 0.0   ;;  %s4342_s26 = scalar_lea.vmem [#allocation6], %s4311_s1  ;;  %s4371_s27 = sld [smem:[#allocation3 + %s4169_s25]] }
  0x34   : > { %v583_v2 = vsel %vm582_vm0, %v4176_v0, 0.0  ;;  %v586_v3 = vsel %vm582_vm0, %v4178_v1, 0.0  ;;  %3658 = vmatprep.subr.bf16.mxu0 %v3657_v19  ;;  %3664 = vmatpush3.bf16.msra.mxu1 %v3661_v23  ;;  %v3247_v48 = vld [vmem:[%s4922_s4] ss:$0 sm:$0xff]  ;;  %v3268_v16 = vld [vmem:[%s4924_s7 + $0x48] sm:$0xff]  ;;  %v3269_v20 = vld [vmem:[%s4924_s7 + $0x50] sm:$0xff] }
  0x35   : > { %584 = vadd.xlane.f32.xlu0 %v583_v2  ;;  %3666 = vmatprep.subr.bf16.mxu1 %v3665_v25  ;;  %v3250_v55 = vld [vmem:[%s4923_s6] ss:$0 sm:$0xff]  ;;  %v3270_v22 = vld [vmem:[%s4924_s7 + $0x58] sm:$0xff]  ;;  %s4374_s21 = sld [smem:[#allocation3 + %s555_s28]]  ;;  %s4013_s25 = smov 120  }
  0x36   : > { %v3267_v15 = vld [vmem:[%s4924_s7 + $0x40] sm:$0xff]  ;;  %v3697_v23 = vpack.c.bf16 %v3270_v22, %v3269_v20  ;;  %s4903_s19 = smov 8   ;;  %s4018_s28 = smov 24  }
  0x37   : > { %3660 = vmatpush3.bf16.msra.mxu0 %v3657_v19  ;;  %v3693_v17 = vpack.c.bf16 %v3268_v16, %v3267_v15  ;;  %v861_v19 = vld [vmem:[%s4924_s7 + $0x18] sm:$0xff]  ;;  %v3260_v24 = vld [vmem:[%s4924_s7 + $0x20] sm:$0xff]  ;;  %s4019_s3 = smov 32  }
  0x38   : > { %3668 = vmatpush3.bf16.msra.mxu1 %v3665_v25  ;;  %v3681_v21 = vpack.c.bf16 %v861_v19, %v860_v18  ;;  %v3261_v25 = vld [vmem:[%s4924_s7 + $0x28] sm:$0xff] }
  0x39   : > { %587 = vadd.xlane.f32.xlu0 %v586_v3  ;;  %3670 = vmatprep.subr.bf16.mxu1 %v3669_v28  ;;  %v3685_v26 = vpack.c.bf16 %v3261_v25, %v3260_v24 }
  0x3c   : > { %3672 = vmatpush3.bf16.msra.mxu1 %v3669_v28 }
  0x3d   : > { %3674 = vmatprep.subr.bf16.mxu1 %v3673_v47 }
  0x40   : > { %3676 = vmatpush3.bf16.msra.mxu1 %v3673_v47  ;;  %v3271_v47 = vld [vmem:[%s4887_s8 + $0x2] ss:$0 sm:$0xff] }
  0x41   : > { %3694 = vmatprep.subr.bf16.mxu1 %v3693_v17 }
  0xc2   : > { %v585_v4 = vpop.xlane.xlu0 %584 }
  0xc3   : > { %v590_v5 = vmul.f32 0.03125, %v585_v4 }
  0xc5   : > { %v592_v6 = vsub.f32 %v4176_v0, %v590_v5 }
  0xc6   : > { %v588_v7 = vpop.xlane.xlu0 %587 }
  0xc7   : > { %v591_v8 = vmul.f32 0.03125, %v588_v7  ;;  %v594_v9 = vmul.f32 %v592_v6, %v592_v6 }
  0xc9   : > { %v593_v10 = vsub.f32 %v4178_v1, %v591_v8  ;;  %v596_v11 = vsel %vm582_vm0, %v594_v9, 0.0 }
  0xca   : > { %597 = vadd.xlane.f32.xlu1 %v596_v11 }
  0xcb   : > { %v595_v12 = vmul.f32 %v593_v10, %v593_v10 }
  0xcd   : > { %v599_v13 = vsel %vm582_vm0, %v595_v12, 0.0  ;;  %v858_v12 = vld [vmem:[%s4924_s7] sm:$0xff] }
  0xce   : > { %600 = vadd.xlane.f32.xlu1 %v599_v13  ;;  %v859_v13 = vld [vmem:[%s4924_s7 + $0x8] sm:$0xff] }
  0xcf   : > { %v3677_v14 = vpack.c.bf16 %v859_v13, %v858_v12 }
  0xd1   : > { %3678 = vmatprep.subr.bf16.mxu0 %v3677_v14 }
 0x157   : > { %v598_v29 = vpop.xlane.xlu1 %597 }
 0x158   : > { %v602_v30 = vmul.f32 0.03125, %v598_v29 }
 0x15a   : > { %v604_v31 = vadd.f32 1e-05, %v602_v30 }
 0x15b   : > { %v601_v32 = vpop.xlane.xlu1 %600 }
 0x15c   : > { %3819 = vrsqrt.f32 %v604_v31  ;;  %v603_v33 = vmul.f32 0.03125, %v601_v32 }
 0x15e   : > { %v605_v34 = vadd.f32 1e-05, %v603_v33 }
 0x160   : > { %3821 = vrsqrt.f32 %v605_v34  ;;  %v3255_v34 = vld [vmem:[%s4881_s2 + $0x2] ss:$0 sm:$0xff] }
 0x166   : > { %v3820_v35 = vpop.eup %3819 }
 0x167   : > { %v608_v37 = vmul.f32 %v3820_v35, %v592_v6 }
 0x169   : > { %v614_v39 = vmul.f32 %v3245_v36, %v608_v37 }
 0x16a   : > { %v3822_v40 = vpop.eup %3821 }
 0x16b   : > { %v609_v41 = vmul.f32 %v3822_v40, %v593_v10  ;;  %v620_v42 = vadd.f32 %v3246_v38, %v614_v39 }
 0x16d   : > { %v615_v43 = vmul.f32 %v3245_v36, %v609_v41  ;;  %3450 = vmatprep.mubr.msk.f32.mxu0 %vm582_vm0, %v620_v42  ;;  %v3262_v41 = vld [vmem:[%s4924_s7 + $0x30] sm:$0xff]  ;;  %v3263_v42 = vld [vmem:[%s4924_s7 + $0x38] sm:$0xff] }
 0x16e   : > { %v3689_v45 = vpack.c.bf16 %v3263_v42, %v3262_v41  ;;  %v3301_v41 = vld [vmem:[%s4924_s7 + $0x78] sm:$0xff] }
 0x16f   : > { %v621_v44 = vadd.f32 %v3246_v38, %v615_v43  ;;  %v3256_v38 = vld [vmem:[%s4881_s2 + $0x3] ss:$0 sm:$0xff] }
 0x171   : > { %3451 = vmatmul.mubr.msk.f32.vlgmr.msra.gmra.mrb[0].mxu0 %vm582_vm0, %v621_v44 }
 0x172   : > { %3680 = vmatpush3.bf16.msra.mxu0 %v3677_v14 }
 0x173   : > { %3682 = vmatprep.subr.bf16.mxu0 %v3681_v21 }
 0x176   : > { %3684 = vmatpush3.bf16.msra.mxu0 %v3681_v21 }
 0x177   : > { %3686 = vmatprep.subr.bf16.mxu0 %v3685_v26 }
 0x244   : > { %v3452_v49 = vpop.f32.mrb[0].mxu0 }
 0x245   : > { %v720_v50 = vadd.f32 %v3452_v49, %v3247_v48  ;;  %v714_v51 = vpop.f32.mrb[1].mxu0 }
 0x246   : > { %v715_v52 = vadd.f32 %v3247_v48, %v714_v51 }
 0x247   : > { %v724_v54 = vmax.f32 %v720_v50, 0.0 }
 0x248   : > { %v723_v53 = vmax.f32 %v715_v52, 0.0 }
 0x24a   : > { %3469 = vmatprep.mubr.msk.f32.mxu1 %vm731_vm1, %v723_v53 }
 0x24b   : > { %3470 = vmatmul.mubr.msk.f32.vlgmr.msra.gmra.mrb[0].mxu1 %vm731_vm1, %v724_v54  ;;  %v3264_v54 = vld [vmem:[%s4887_s8 + $0x1] ss:$0 sm:$0xff] }
 0x24c   : > { %3696 = vmatpush3.bf16.msra.mxu1 %v3693_v17 }
 0x24d   : > { %3698 = vmatprep.subr.bf16.mxu1 %v3697_v23 }
 0x250   : > { %3700 = vmatpush3.bf16.msra.mxu1 %v3697_v23 }
 0x251   : > { %3505 = vmatprep.subr.mxu1 %v4010_v46 }
 0x31e   : > { %v3471_v56 = vpop.f32.mrb[0].mxu1 }
 0x31f   : > { %v810_v57 = vadd.f32 %v3471_v56, %v3250_v55  ;;  %v804_v58 = vpop.f32.mrb[1].mxu1 }
 0x320   : > { %v805_v59 = vadd.f32 %v3250_v55, %v804_v58  ;;  %v3257_v58 = vld [vmem:[%s4887_s8] ss:$0 sm:$0xff] }
 0x321   : > { %v814_v60 = vmul.f32 0.5, %v810_v57 }
 0x322   : > { %v813_v61 = vmul.f32 0.5, %v805_v59 }
 0x323   : > { %v4241_v62 = vadd.f32 %v814_v60, %v4178_v1 }
 0x324   : > { %v4244_v63 = vadd.f32 %v813_v61, %v4176_v0 }
 0x325   : > { %v823_v2 = vsel %vm582_vm0, %v4241_v62, 0.0 }
 0x326   : > { %824 = vadd.xlane.f32.xlu1 %v823_v2  ;;  %v820_v3 = vsel %vm582_vm0, %v4244_v63, 0.0  ;;  %v558_v2 = vlaneseq }
 0x327   : > { %821 = vadd.xlane.f32.xlu0 %v820_v3 }
 0x328   : > { %v559_v3 = vand.u32 127, %v558_v2 }
 0x3b3   : > { %v825_v4 = vpop.xlane.xlu1 %824 }
 0x3b4   : > { %v827_v5 = vmul.f32 0.03125, %v825_v4  ;;  %v822_v6 = vpop.xlane.xlu0 %821  ;;  %v554_v4 = vstv %s4371_s27  ;;  %s4017_s27 = smov 16  }
 0x3b5   : > { %v826_v7 = vmul.f32 0.03125, %v822_v6  ;;  %vm4377_vm4 = vcmp.lt.s32.totalorder %v559_v3, %v554_v4  ;;  %v557_v6 = vstv %s4374_s21  ;;  %s4740_s21 = sshll.u32 %s4139_s11, 8 }
 0x3b6   : > { %v829_v8 = vsub.f32 %v4241_v62, %v827_v5  ;;  %vm4386_vm5 = vcmp.lt.s32.totalorder %v559_v3, %v557_v6  ;;  %s4746_s5 = scalar_lea.hbm %s4895_s16, %s4740_s21 }
 0x3b7   : > { %v828_v1 = vsub.f32 %v4244_v63, %v826_v7 }
 0x3b8   : > { %v831_v9 = vmul.f32 %v829_v8, %v829_v8 }
 0x3b9   : > { %v830_v10 = vmul.f32 %v828_v1, %v828_v1 }
 0x3ba   : > { %v835_v0 = vsel %vm582_vm0, %v831_v9, 0.0 }
 0x3bb   : > { %836 = vadd.xlane.f32.xlu1 %v835_v0  ;;  %v832_v11 = vsel %vm582_vm0, %v830_v10, 0.0 }
 0x3bc   : > { %833 = vadd.xlane.f32.xlu0 %v832_v11 }
 0x448   : > { %v837_v27 = vpop.xlane.xlu1 %836 }
 0x449   : > { %v839_v28 = vmul.f32 0.03125, %v837_v27  ;;  %v834_v29 = vpop.xlane.xlu0 %833 }
 0x44a   : > { %v838_v30 = vmul.f32 0.03125, %v834_v29 }
 0x44b   : > { %v841_v31 = vadd.f32 1e-05, %v839_v28 }
 0x44c   : > { %v840_v32 = vadd.f32 1e-05, %v838_v30 }
 0x44d   : > { %3823 = vrsqrt.f32 %v841_v31 }
 0x44e   : > { %3825 = vrsqrt.f32 %v840_v32  ;;  %v4408_v32 = vshrl.u32 %v558_v2, 7 }
 0x450   : > { %vm4411_vm6 = vcmp.lt.s32.totalorder %v4408_v32, %v554_v4  ;;  %vm4424_vm8 = vcmp.lt.s32.totalorder %v4408_v32, %v557_v6  ;;  %vm2639_vm12 = vcmp.eq.s32.totalorder %v4408_v32, 7  ;;  %vm2642_vm13 = vcmp.lt.s32.totalorder %v4408_v32, 7 }
 0x451   : > { %vm4419_vm7 = vmand %vm4411_vm6, %vm4377_vm4  ;;  %vm2632_vm14 = vcmp.lt.s32.totalorder %v4408_v32, 1  ;;  %vm2629_vm15 = vcmp.eq.s32.totalorder %v4408_v32, 0  ;;  %v3309_v32 = vld [vmem:[%s4889_s10] ss:$0 sm:$0xff] }
 0x452   : > { %vm4434_vm9 = vmand %vm4424_vm8, %vm4386_vm5 }
 0x457   : > { %v3824_v33 = vpop.eup %3823 }
 0x458   : > { %v3826_v35 = vpop.eup %3825  ;;  %v845_v36 = vmul.f32 %v3824_v33, %v829_v8  ;;  %v4012_v8 = vmov -1e+30  }
 0x459   : > { %v844_v37 = vmul.f32 %v3826_v35, %v828_v1  ;;  %v4384_v1 = vsel %vm4377_vm4, 0.0, %v4012_v8  ;;  %v4393_v13 = vsel %vm4386_vm5, 0.0, %v4012_v8 }
 0x45a   : > { %v851_v39 = vmul.f32 %v3255_v34, %v845_v36  ;;  %v3300_v36 = vld [vmem:[%s4924_s7 + $0x70] sm:$0xff] }
 0x45b   : > { %v850_v40 = vmul.f32 %v3255_v34, %v844_v37 }
 0x45c   : > { %v857_v44 = vadd.f32 %v3256_v38, %v851_v39 }
 0x45d   : > { %v856_v43 = vadd.f32 %v3256_v38, %v850_v40 }
 0x45f   : > { %3480 = vmatprep.mubr.msk.f32.mxu0 %vm582_vm0, %v856_v43  ;;  %3502 = vmatprep.mubr.msk.f32.mxu1 %vm582_vm0, %v856_v43 }
 0x460   : > { %3481 = vmatmul.mubr.msk.f32.vlgmr.msra.gmra.mrb[2].mxu0 %vm582_vm0, %v857_v44  ;;  %3503 = vmatmul.mubr.msk.f32.vlgmr.msra.gmra.mrb[2].mxu1 %vm582_vm0, %v857_v44 }
 0x461   : > { %3688 = vmatpush3.bf16.msra.mxu0 %v3685_v26  ;;  %3491 = vmatprep.mubr.msk.f32.mxu0 %vm582_vm0, %v856_v43 }
 0x462   : > { %3690 = vmatprep.subr.bf16.mxu0 %v3689_v45  ;;  %3507 = vmatprep.mubr.msk.f32.mxu1 %vm4011_vm2, %v4010_v46 }
 0x465   : > { %3692 = vmatpush3.bf16.msra.mxu0 %v3689_v45 }
 0x466   : > { %3515 = vmatprep.subr.mxu0 %v4010_v46 }
 0x468   : > { %3492 = vmatmul.mubr.msk.f32.vlgmr.msra.gmra.mrb[4].mxu0 %vm582_vm0, %v857_v44 }
 0x469   : > { %3517 = vmatprep.mubr.msk.f32.mxu0 %vm4011_vm2, %v4010_v46 }
 0x533   : > { %v3482_v48 = vpop.f32.mrb[2].mxu0  ;;  %v3504_v49 = vpop.f32.mrb[2].mxu1 }
 0x534   : > { %v4316_v50 = vadd.f32 %v3504_v49, %v3271_v47  ;;  %v939_v51 = vpop.f32.mrb[3].mxu0  ;;  %v1109_v52 = vpop.f32.mrb[3].mxu1  ;;  %v4361_v61 = vadd.f32 %v3482_v48, %v3257_v58 }
 0x535   : > { %v4318_v53 = vadd.f32 %v3271_v47, %v1109_v52  ;;  %v4352_v60 = vadd.f32 %v3257_v58, %v939_v51 }
 0x536   : > { %1121 = vst.msk [vmem:[%s4321_s20 + $0x8] sm:$0xff] %vm582_vm0, %v4316_v50 }
 0x537   : > { %1120 = vst.msk [vmem:[%s4321_s20] sm:$0xff] %vm582_vm0, %v4318_v53  ;;  %3516 = vmatpush3.msra.mxu0 %v4318_v53 }
 0x538   : > { %3525 = vmatprep.subr.mxu0 %v4010_v46 }
 0x53b   : > { %v3493_v55 = vpop.f32.mrb[4].mxu0 }
 0x53c   : > { %v4334_v56 = vadd.f32 %v3493_v55, %v3264_v54  ;;  %v1024_v57 = vpop.f32.mrb[5].mxu0 }
 0x53d   : > { %v4339_v59 = vadd.f32 %v3264_v54, %v1024_v57 }
 0x53e   : > { %1119 = vst.msk [vmem:[%s4342_s26 + $0x8] sm:$0xff] %vm582_vm0, %v4334_v56 }
 0x53f   : > { %3506 = vmatpush3.xpose.msk.msra.mxu1 %vm1122_vm3, %v4339_v59  ;;  %1118 = vst.msk [vmem:[%s4342_s26] sm:$0xff] %vm582_vm0, %v4339_v59 }
 0x540   : > { %3510 = vmatprep.subr.mxu1 %v4010_v46 }
 0x542   : > { %3508 = vmatmul.mubr.msk.f32.vlgmr.msra.gmra.mrb[4].mxu1 %vm1122_vm3, %v4352_v60 }
 0x543   : > { %3511 = vmatpush3.xpose.msk.msra.mxu1 %vm1122_vm3, %v4334_v56  ;;  %3512 = vmatprep.mubr.msk.f32.mxu1 %vm4011_vm2, %v4010_v46 }
 0x544   : > { %3520 = vmatprep.subr.mxu1 %v4010_v46 }
 0x546   : > { %3513 = vmatmul.mubr.msk.f32.vlgmr.msra.gmra.mrb[6].mxu1 %vm1122_vm3, %v4361_v61 }
 0x547   : > { %3521 = vmatpush3.msra.mxu1 %v4316_v50  ;;  %3522 = vmatprep.mubr.msk.f32.mxu1 %vm4011_vm2, %v4010_v46 }
 0x548   : > { %3530 = vmatprep.subr.mxu1 %v4010_v46 }
 0x615   : > { %v1195_v7 = vpop.f32.mrb[4].mxu1 }
 0x616   : > { %v1275_v9 = vmul.f32 0.35355338, %v1195_v7  ;;  %v3509_v10 = vpop.f32.mrb[5].mxu1 }
 0x618   : > { %v1277_v11 = vadd.f32 %v1275_v9, %v4384_v1 }
 0x619   : > { %v1271_v12 = vpop.f32.mrb[6].mxu1 }
 0x61a   : > { %v1276_v14 = vmul.f32 0.35355338, %v1271_v12  ;;  %v3514_v15 = vpop.f32.mrb[7].mxu1  ;;  %v1279_v16 = vsel %vm1122_vm3, %v1277_v11, -inf }
 0x61b   : > { %1280 = vmax.xlane.f32.xlu0 %v1279_v16 }
 0x61c   : > { %v1278_v17 = vadd.f32 %v1276_v14, %v4393_v13 }
 0x61e   : > { %v1282_v18 = vsel %vm1122_vm3, %v1278_v17, -inf }
 0x61f   : > { %1283 = vmax.xlane.f32.xlu1 %v1282_v18 }
 0x630   : > { %1529 = vrot.lane.b32.xlu1 %v4334_v56, %s4013_s25 }
 0x634   : > { %1449 = vrot.lane.b32.xlu1 %v4352_v60, %s4013_s25 }
 0x6a8   : > { %v1281_v19 = vpop.xlane.xlu0 %1280 }
 0x6a9   : > { %v1285_v20 = vsub.f32 %v1277_v11, %v1281_v19 }
 0x6ab   : > { %v1287_v21 = vmul.f32 1.442695, %v1285_v20 }
 0x6ac   : > { %v1284_v22 = vpop.xlane.xlu1 %1283 }
 0x6ad   : > { %3827 = vpow2.f32 %v1287_v21  ;;  %v1286_v23 = vsub.f32 %v1278_v17, %v1284_v22 }
 0x6af   : > { %v1289_v24 = vmul.f32 1.442695, %v1286_v23 }
 0x6b0   : > { %v1530_v29 = vpop.permute.xlu1 %1529 }
 0x6b1   : > { %3829 = vpow2.f32 %v1289_v24 }
 0x6b4   : > { %v1450_v30 = vpop.permute.xlu1 %1449 }
 0x6b7   : > { %v3828_v25 = vpop.eup %3827 }
 0x6b8   : > { %v1291_v26 = vsel %vm1122_vm3, %v3828_v25, 0.0 }
 0x6b9   : > { %1292 = vadd.xlane.f32.xlu0 %v1291_v26 }
 0x6bb   : > { %v3830_v27 = vpop.eup %3829 }
 0x6bc   : > { %v1294_v28 = vsel %vm1122_vm3, %v3830_v27, 0.0 }
 0x6bd   : > { %1295 = vadd.xlane.f32.xlu1 %v1294_v28 }
 0x6ce   : > { %1527 = vrot.lane.b32.xlu1 %v4361_v61, %s4013_s25 }
 0x6cf   : > { %1451 = vrot.lane.b32.xlu0 %v4339_v59, %s4013_s25 }
 0x746   : > { %v1293_v31 = vpop.xlane.xlu0 %1292 }
 0x747   : > { %3831 = vrcp.f32 %v1293_v31 }
 0x74a   : > { %v1296_v33 = vpop.xlane.xlu1 %1295  ;;  %v1452_v42 = vpop.permute.xlu0 %1451 }
 0x74b   : > { %3833 = vrcp.f32 %v1296_v33 }
 0x74e   : > { %v1528_v45 = vpop.permute.xlu1 %1527 }
 0x751   : > { %v3832_v35 = vpop.eup %3831 }
 0x752   : > { %v1299_v38 = vmul.f32 %v3832_v35, %v3828_v25 }
 0x754   : > { %v1301_v39 = vsel %vm4419_vm7, %v1299_v38, 0.0 }
 0x755   : > { %v3834_v40 = vpop.eup %3833  ;;  %3518 = vmatmul.mubr.msk.f32.vlgmr.msra.gmra.mrb[6].mxu0 %vm1122_vm3, %v1301_v39 }
 0x756   : > { %3526 = vmatpush3.xpose.msk.msra.mxu0 %vm1122_vm3, %v1452_v42  ;;  %3527 = vmatprep.mubr.msk.f32.mxu0 %vm4011_vm2, %v4010_v46  ;;  %v1300_v43 = vmul.f32 %v3834_v40, %v3830_v27 }
 0x757   : > { %3535 = vmatprep.subr.mxu0 %v4010_v46 }
 0x758   : > { %v1302_v44 = vsel %vm4434_vm9, %v1300_v43, 0.0 }
 0x759   : > { %3523 = vmatmul.mubr.msk.f32.vlgmr.msra.gmra.mrb[8].mxu1 %vm1122_vm3, %v1302_v44  ;;  %3528 = vmatmul.mubr.msk.f32.vlgmr.msra.gmra.mrb[8].mxu0 %vm1122_vm3, %v1450_v30 }
 0x75a   : > { %3531 = vmatpush3.xpose.msk.msra.mxu1 %vm1122_vm3, %v1530_v29  ;;  %3532 = vmatprep.mubr.msk.f32.mxu1 %vm4011_vm2, %v4010_v46 }
 0x75b   : > { %3540 = vmatprep.subr.mxu1 %v4010_v46  ;;  %3537 = vmatprep.mubr.msk.f32.mxu0 %vm4011_vm2, %v4010_v46 }
 0x75d   : > { %3533 = vmatmul.mubr.msk.f32.vlgmr.msra.gmra.mrb[10].mxu1 %vm1122_vm3, %v1528_v45 }
 0x75e   : > { %3542 = vmatprep.mubr.msk.f32.mxu1 %vm4011_vm2, %v4010_v46 }
 0x828   : > { %v4456_v47 = vpop.f32.mrb[6].mxu0 }
 0x829   : > { %v3519_v48 = vpop.f32.mrb[7].mxu0 }
 0x82c   : > { %v4458_v49 = vpop.f32.mrb[8].mxu1  ;;  %v1523_v51 = vpop.f32.mrb[8].mxu0 }
 0x82d   : > { %v1605_v52 = vmul.f32 0.35355338, %v1523_v51  ;;  %v3524_v54 = vpop.f32.mrb[9].mxu1  ;;  %v3529_v55 = vpop.f32.mrb[9].mxu0 }
 0x82f   : > { %v1607_v57 = vadd.f32 %v1605_v52, %v4384_v1 }
 0x830   : > { %v1601_v58 = vpop.f32.mrb[10].mxu1 }
 0x831   : > { %v1606_v2 = vmul.f32 0.35355338, %v1601_v58  ;;  %v3534_v3 = vpop.f32.mrb[11].mxu1  ;;  %v1609_v4 = vsel %vm1122_vm3, %v1607_v57, -inf }
 0x832   : > { %1610 = vmax.xlane.f32.xlu0 %v1609_v4 }
 0x833   : > { %v1608_v5 = vadd.f32 %v1606_v2, %v4393_v13 }
 0x835   : > { %v1612_v6 = vsel %vm1122_vm3, %v1608_v5, -inf }
 0x836   : > { %1613 = vmax.xlane.f32.xlu1 %v1612_v6 }
 0x847   : > { %1711 = vrot.lane.b32.xlu1 %v4316_v50, %s4013_s25 }
 0x848   : > { %1634 = vrot.lane.b32.xlu0 %v4318_v53, %s4013_s25 }
 0x84b   : > { %1789 = vrot.lane.b32.xlu1 %v4339_v59, %s4014_s30 }
 0x84f   : > { %1867 = vrot.lane.b32.xlu1 %v4334_v56, %s4014_s30 }
 0x853   : > { %1865 = vrot.lane.b32.xlu1 %v4361_v61, %s4014_s30 }
 0x8bf   : > { %v1611_v7 = vpop.xlane.xlu0 %1610 }
 0x8c0   : > { %v1615_v8 = vsub.f32 %v1607_v57, %v1611_v7 }
 0x8c2   : > { %v1617_v9 = vmul.f32 1.442695, %v1615_v8 }
 0x8c3   : > { %v1635_v10 = vpop.permute.xlu0 %1634  ;;  %v1614_v0 = vpop.xlane.xlu1 %1613 }
 0x8c4   : > { %3835 = vpow2.f32 %v1617_v9  ;;  %v1616_v11 = vsub.f32 %v1608_v5, %v1614_v0  ;;  %3536 = vmatpush3.msra.mxu0 %v1635_v10 }
 0x8c5   : > { %3545 = vmatprep.subr.mxu0 %v4010_v46 }
 0x8c6   : > { %v1619_v12 = vmul.f32 1.442695, %v1616_v11 }
 0x8c7   : > { %v1712_v14 = vpop.permute.xlu1 %1711 }
 0x8c8   : > { %3837 = vpow2.f32 %v1619_v12  ;;  %3541 = vmatpush3.msra.mxu1 %v1712_v14 }
 0x8c9   : > { %3550 = vmatprep.subr.mxu1 %v4010_v46 }
 0x8cb   : > { %v1790_v21 = vpop.permute.xlu1 %1789 }
 0x8ce   : > { %v3836_v15 = vpop.eup %3835 }
 0x8cf   : > { %v1621_v16 = vsel %vm1122_vm3, %v3836_v15, 0.0  ;;  %v1868_v26 = vpop.permute.xlu1 %1867 }
 0x8d0   : > { %1622 = vadd.xlane.f32.xlu0 %v1621_v16 }
 0x8d2   : > { %v3838_v17 = vpop.eup %3837 }
 0x8d3   : > { %v1624_v18 = vsel %vm1122_vm3, %v3838_v17, 0.0  ;;  %v1866_v30 = vpop.permute.xlu1 %1865 }
 0x8d4   : > { %1625 = vadd.xlane.f32.xlu0 %v1624_v18 }
 0x8ea   : > { %1787 = vrot.lane.b32.xlu0 %v4352_v60, %s4014_s30 }
 0x95d   : > { %v1623_v19 = vpop.xlane.xlu0 %1622 }
 0x95e   : > { %3839 = vrcp.f32 %v1623_v19 }
 0x961   : > { %v1626_v20 = vpop.xlane.xlu0 %1625 }
 0x962   : > { %3841 = vrcp.f32 %v1626_v20 }
 0x965   : > { %v1788_v28 = vpop.permute.xlu0 %1787 }
 0x968   : > { %v3840_v22 = vpop.eup %3839 }
 0x969   : > { %v1629_v23 = vmul.f32 %v3840_v22, %v3836_v15 }
 0x96b   : > { %v1631_v24 = vsel %vm4419_vm7, %v1629_v23, 0.0 }
 0x96c   : > { %v3842_v25 = vpop.eup %3841  ;;  %3538 = vmatmul.mubr.msk.f32.vlgmr.msra.gmra.mrb[10].mxu0 %vm1122_vm3, %v1631_v24 }
 0x96d   : > { %3546 = vmatpush3.xpose.msk.msra.mxu0 %vm1122_vm3, %v1790_v21  ;;  %3547 = vmatprep.mubr.msk.f32.mxu0 %vm4011_vm2, %v4010_v46  ;;  %v1630_v27 = vmul.f32 %v3842_v25, %v3838_v17 }
 0x96e   : > { %3555 = vmatprep.subr.mxu0 %v4010_v46 }
 0x96f   : > { %v1632_v29 = vsel %vm4434_vm9, %v1630_v27, 0.0 }
 0x970   : > { %3543 = vmatmul.mubr.msk.f32.vlgmr.msra.gmra.mrb[12].mxu1 %vm1122_vm3, %v1632_v29  ;;  %3548 = vmatmul.mubr.msk.f32.vlgmr.msra.gmra.mrb[12].mxu0 %vm1122_vm3, %v1788_v28 }
 0x971   : > { %3551 = vmatpush3.xpose.msk.msra.mxu1 %vm1122_vm3, %v1868_v26  ;;  %3552 = vmatprep.mubr.msk.f32.mxu1 %vm4011_vm2, %v4010_v46 }
 0x972   : > { %3560 = vmatprep.subr.mxu1 %v4010_v46  ;;  %3557 = vmatprep.mubr.msk.f32.mxu0 %vm4011_vm2, %v4010_v46 }
 0x974   : > { %3553 = vmatmul.mubr.msk.f32.vlgmr.msra.gmra.mrb[14].mxu1 %vm1122_vm3, %v1866_v30 }
 0x975   : > { %3562 = vmatprep.mubr.msk.f32.mxu1 %vm4011_vm2, %v4010_v46 }
 0xa3f   : > { %v4500_v31 = vpop.f32.mrb[10].mxu0 }
 0xa40   : > { %v3539_v33 = vpop.f32.mrb[11].mxu0 }
 0xa43   : > { %v4502_v35 = vpop.f32.mrb[12].mxu1  ;;  %v1861_v38 = vpop.f32.mrb[12].mxu0 }
 0xa44   : > { %v1943_v39 = vmul.f32 0.35355338, %v1861_v38  ;;  %v3544_v40 = vpop.f32.mrb[13].mxu1  ;;  %v3549_v42 = vpop.f32.mrb[13].mxu0 }
 0xa46   : > { %v1945_v43 = vadd.f32 %v1943_v39, %v4384_v1 }
 0xa47   : > { %v1939_v44 = vpop.f32.mrb[14].mxu1 }
 0xa48   : > { %v1944_v45 = vmul.f32 0.35355338, %v1939_v44  ;;  %v3554_v48 = vpop.f32.mrb[15].mxu1  ;;  %v1947_v51 = vsel %vm1122_vm3, %v1945_v43, -inf }
 0xa49   : > { %1948 = vmax.xlane.f32.xlu0 %v1947_v51 }
 0xa4a   : > { %v1946_v52 = vadd.f32 %v1944_v45, %v4393_v13 }
 0xa4c   : > { %v1950_v54 = vsel %vm1122_vm3, %v1946_v52, -inf }
 0xa4d   : > { %1951 = vmax.xlane.f32.xlu1 %v1950_v54 }
 0xa5e   : > { %2047 = vrot.lane.b32.xlu1 %v4316_v50, %s4014_s30 }
 0xa5f   : > { %1971 = vrot.lane.b32.xlu0 %v4318_v53, %s4014_s30  ;;  %s4937_s30 = sld [smem:[#allocation22_spill]] }
 0xa62   : > { %2125 = vrot.lane.b32.xlu1 %v4339_v59, %s4015_s22 }
 0xa66   : > { %2203 = vrot.lane.b32.xlu1 %v4334_v56, %s4015_s22 }
 0xa6a   : > { %2201 = vrot.lane.b32.xlu1 %v4361_v61, %s4015_s22 }
 0xad6   : > { %v1949_v55 = vpop.xlane.xlu0 %1948 }
 0xad7   : > { %v1953_v57 = vsub.f32 %v1945_v43, %v1949_v55 }
 0xad9   : > { %v1955_v58 = vmul.f32 1.442695, %v1953_v57 }
 0xada   : > { %v1972_v2 = vpop.permute.xlu0 %1971  ;;  %v1952_v3 = vpop.xlane.xlu1 %1951 }
 0xadb   : > { %3843 = vpow2.f32 %v1955_v58  ;;  %v1954_v4 = vsub.f32 %v1946_v52, %v1952_v3  ;;  %3556 = vmatpush3.msra.mxu0 %v1972_v2 }
 0xadc   : > { %3565 = vmatprep.subr.mxu0 %v4010_v46 }
 0xadd   : > { %v1957_v5 = vmul.f32 1.442695, %v1954_v4  ;;  %v3299_v4 = vld [vmem:[%s4924_s7 + $0x68] sm:$0xff] }
 0xade   : > { %v2048_v6 = vpop.permute.xlu1 %2047 }
 0xadf   : > { %3845 = vpow2.f32 %v1957_v5  ;;  %3561 = vmatpush3.msra.mxu1 %v2048_v6  ;;  %v3705_v6 = vpack.c.bf16 %v3301_v41, %v3300_v36 }
 0xae0   : > { %3570 = vmatprep.subr.mxu1 %v4010_v46 }
 0xae2   : > { %v2126_v10 = vpop.permute.xlu1 %2125 }
 0xae5   : > { %v3844_v56 = vpop.eup %3843 }
 0xae6   : > { %v1959_v59 = vsel %vm1122_vm3, %v3844_v56, 0.0  ;;  %v2204_v15 = vpop.permute.xlu1 %2203 }
 0xae7   : > { %1960 = vadd.xlane.f32.xlu0 %v1959_v59 }
 0xae9   : > { %v3846_v61 = vpop.eup %3845 }
 0xaea   : > { %v1962_v7 = vsel %vm1122_vm3, %v3846_v61, 0.0  ;;  %v2202_v18 = vpop.permute.xlu1 %2201 }
 0xaeb   : > { %1963 = vadd.xlane.f32.xlu0 %v1962_v7 }
 0xb01   : > { %2123 = vrot.lane.b32.xlu0 %v4352_v60, %s4015_s22 }
 0xb74   : > { %v1961_v8 = vpop.xlane.xlu0 %1960 }
 0xb75   : > { %3847 = vrcp.f32 %v1961_v8 }
 0xb78   : > { %v1964_v9 = vpop.xlane.xlu0 %1963 }
 0xb79   : > { %3849 = vrcp.f32 %v1964_v9 }
 0xb7c   : > { %v2124_v16 = vpop.permute.xlu0 %2123 }
 0xb7f   : > { %v3848_v0 = vpop.eup %3847 }
 0xb80   : > { %v1967_v11 = vmul.f32 %v3848_v0, %v3844_v56 }
 0xb82   : > { %v1969_v12 = vsel %vm4419_vm7, %v1967_v11, 0.0 }
 0xb83   : > { %v3850_v14 = vpop.eup %3849  ;;  %3558 = vmatmul.mubr.msk.f32.vlgmr.msra.gmra.mrb[14].mxu0 %vm1122_vm3, %v1969_v12 }
 0xb84   : > { %3566 = vmatpush3.xpose.msk.msra.mxu0 %vm1122_vm3, %v2126_v10  ;;  %3567 = vmatprep.mubr.msk.f32.mxu0 %vm4011_vm2, %v4010_v46  ;;  %v1968_v60 = vmul.f32 %v3850_v14, %v3846_v61 }
 0xb85   : > { %3575 = vmatprep.subr.mxu0 %v4010_v46 }
 0xb86   : > { %v1970_v17 = vsel %vm4434_vm9, %v1968_v60, 0.0 }
 0xb87   : > { %3563 = vmatmul.mubr.msk.f32.vlgmr.msra.gmra.mrb[16].mxu1 %vm1122_vm3, %v1970_v17  ;;  %3568 = vmatmul.mubr.msk.f32.vlgmr.msra.gmra.mrb[16].mxu0 %vm1122_vm3, %v2124_v16 }
 0xb88   : > { %3571 = vmatpush3.xpose.msk.msra.mxu1 %vm1122_vm3, %v2204_v15  ;;  %3572 = vmatprep.mubr.msk.f32.mxu1 %vm4011_vm2, %v4010_v46 }
 0xb89   : > { %3580 = vmatprep.subr.mxu1 %v4010_v46  ;;  %3577 = vmatprep.mubr.msk.f32.mxu0 %vm4011_vm2, %v4010_v46 }
 0xb8b   : > { %3573 = vmatmul.mubr.msk.f32.vlgmr.msra.gmra.mrb[18].mxu1 %vm1122_vm3, %v2202_v18 }
 0xb8c   : > { %3582 = vmatprep.mubr.msk.f32.mxu1 %vm4011_vm2, %v4010_v46  ;;  %vm2688_vm2 = vcmask 785408  }
 0xc56   : > { %v2043_v19 = vpop.f32.mrb[14].mxu0 }
 0xc57   : > { %v3559_v20 = vpop.f32.mrb[15].mxu0 }
 0xc5a   : > { %v2119_v21 = vpop.f32.mrb[16].mxu1  ;;  %v2197_v22 = vpop.f32.mrb[16].mxu0 }
 0xc5b   : > { %v2279_v23 = vmul.f32 0.35355338, %v2197_v22  ;;  %v3564_v24 = vpop.f32.mrb[17].mxu1  ;;  %v3569_v25 = vpop.f32.mrb[17].mxu0 }
 0xc5d   : > { %v2281_v26 = vadd.f32 %v2279_v23, %v4384_v1 }
 0xc5e   : > { %v2275_v27 = vpop.f32.mrb[18].mxu1 }
 0xc5f   : > { %v2280_v28 = vmul.f32 0.35355338, %v2275_v27  ;;  %v3574_v29 = vpop.f32.mrb[19].mxu1  ;;  %v2283_v30 = vsel %vm1122_vm3, %v2281_v26, -inf }
 0xc60   : > { %2284 = vmax.xlane.f32.xlu0 %v2283_v30 }
 0xc61   : > { %v2282_v33 = vadd.f32 %v2280_v28, %v4393_v13 }
 0xc63   : > { %v2286_v38 = vsel %vm1122_vm3, %v2282_v33, -inf }
 0xc64   : > { %2287 = vmax.xlane.f32.xlu1 %v2286_v38 }
 0xc75   : > { %2383 = vrot.lane.b32.xlu1 %v4316_v50, %s4015_s22 }
 0xc79   : > { %2461 = vrot.lane.b32.xlu1 %v4500_v31, %s4903_s19 }
 0xc7d   : > { %2463 = vrot.lane.b32.xlu1 %v4502_v35, %s4903_s19  ;;  %s4020_s19 = smov 64  }
 0xc81   : > { %2471 = vrot.lane.b32.xlu1 %v2119_v21, %s4017_s27 }
 0xced   : > { %v2285_v1 = vpop.xlane.xlu0 %2284 }
 0xcee   : > { %v2289_v39 = vsub.f32 %v2281_v26, %v2285_v1 }
 0xcf0   : > { %v2291_v40 = vmul.f32 1.442695, %v2289_v39  ;;  %v2669_v39 = vld [vmem:[%s4888_s9] sm:$0xff] }
 0xcf1   : > { %v2288_v42 = vpop.xlane.xlu1 %2287 }
 0xcf2   : > { %3851 = vpow2.f32 %v2291_v40  ;;  %v2290_v13 = vsub.f32 %v2282_v33, %v2288_v42  ;;  %v2670_v40 = vld [vmem:[%s4888_s9 + $0x8] sm:$0xff]  ;;  %v2671_v42 = vld [vmem:[%s4888_s9 + $0x10] sm:$0xff] }
 0xcf4   : > { %v2293_v43 = vmul.f32 1.442695, %v2290_v13  ;;  %v3709_v13 = vpack.c.bf16 %v2670_v40, %v2669_v39 }
 0xcf5   : > { %v2384_v44 = vpop.permute.xlu1 %2383 }
 0xcf6   : > { %3853 = vpow2.f32 %v2293_v43  ;;  %3581 = vmatpush3.msra.mxu1 %v2384_v44  ;;  %v2672_v43 = vld [vmem:[%s4888_s9 + $0x18] sm:$0xff] }
 0xcf7   : > { %v3713_v44 = vpack.c.bf16 %v2672_v43, %v2671_v42  ;;  %3710 = vmatprep.subr.bf16.mxu1 %v3709_v13 }
 0xcf9   : > { %v2462_v8 = vpop.permute.xlu1 %2461 }
 0xcfa   : > { %v2483_v0 = vsel %vm1122_vm3, %v4456_v47, %v2462_v8  ;;  %v3304_v47 = vld [vmem:[%s4887_s8 + $0x3] ss:$0 sm:$0xff]  ;;  %v3243_v8 = vsel %vm4411_vm6, 1.0, %v4010_v46 }
 0xcfc   : > { %v3852_v50 = vpop.eup %3851 }
 0xcfd   : > { %v2295_v45 = vsel %vm1122_vm3, %v3852_v50, 0.0  ;;  %v2464_v9 = vpop.permute.xlu1 %2463 }
 0xcfe   : > { %2296 = vadd.xlane.f32.xlu0 %v2295_v45  ;;  %v2484_v60 = vsel %vm1122_vm3, %v4458_v49, %v2464_v9  ;;  %v2674_v45 = vld [vmem:[%s4888_s9 + $0x28] sm:$0xff] }
 0xd00   : > { %v3854_v31 = vpop.eup %3853 }
 0xd01   : > { %v2298_v48 = vsel %vm1122_vm3, %v3854_v31, 0.0  ;;  %v2472_v11 = vpop.permute.xlu1 %2471 }
 0xd02   : > { %2299 = vadd.xlane.f32.xlu0 %v2298_v48  ;;  %v2487_v16 = vsel %vm2485_vm11, %v2484_v60, %v2472_v11 }
 0xd18   : > { %2307 = vrot.lane.b32.xlu0 %v4318_v53, %s4015_s22  ;;  %v3298_v53 = vld [vmem:[%s4924_s7 + $0x60] sm:$0xff]  ;;  %s4938_s22 = smov %s4937_s30 }
 0xd19   : > { %v3701_v5 = vpack.c.bf16 %v3299_v4, %v3298_v53  ;;  %v2678_v53 = vld [vmem:[%s4888_s9 + $0x48] sm:$0xff] }
 0xd1c   : > { %2469 = vrot.lane.b32.xlu0 %v2043_v19, %s4017_s27 }
 0xd8b   : > { %v2297_v35 = vpop.xlane.xlu0 %2296 }
 0xd8c   : > { %3855 = vrcp.f32 %v2297_v35 }
 0xd8f   : > { %v2300_v51 = vpop.xlane.xlu0 %2299 }
 0xd90   : > { %3857 = vrcp.f32 %v2300_v51 }
 0xd93   : > { %v2308_v52 = vpop.permute.xlu0 %2307 }
 0xd94   : > { %3576 = vmatpush3.msra.mxu0 %v2308_v52 }
 0xd95   : > { %3702 = vmatprep.subr.bf16.mxu0 %v3701_v5 }
 0xd96   : > { %v3856_v54 = vpop.eup %3855 }
 0xd97   : > { %v2303_v55 = vmul.f32 %v3856_v54, %v3852_v50  ;;  %v2470_v10 = vpop.permute.xlu0 %2469  ;;  %v2673_v50 = vld [vmem:[%s4888_s9 + $0x20] sm:$0xff] }
 0xd98   : > { %v2486_v12 = vsel %vm2485_vm11, %v2483_v0, %v2470_v10 }
 0xd99   : > { %v2305_v57 = vsel %vm4419_vm7, %v2303_v55, 0.0 }
 0xd9a   : > { %v3858_v58 = vpop.eup %3857  ;;  %3578 = vmatmul.mubr.msk.f32.vlgmr.msra.gmra.mrb[18].mxu0 %vm1122_vm3, %v2305_v57  ;;  %v2675_v57 = vld [vmem:[%s4888_s9 + $0x30] sm:$0xff] }
 0xd9b   : > { %v2304_v2 = vmul.f32 %v3858_v58, %v3854_v31  ;;  %3704 = vmatpush3.bf16.msra.mxu0 %v3701_v5  ;;  %v3717_v31 = vpack.c.bf16 %v2674_v45, %v2673_v50  ;;  %v2676_v58 = vld [vmem:[%s4888_s9 + $0x38] sm:$0xff]  ;;  %v3307_v5 = vld [vmem:[%s4881_s2 + $0x4] ss:$0 sm:$0xff] }
 0xd9c   : > { %3706 = vmatprep.subr.bf16.mxu0 %v3705_v6 }
 0xd9d   : > { %v2306_v3 = vsel %vm4434_vm9, %v2304_v2, 0.0  ;;  %v3721_v2 = vpack.c.bf16 %v2676_v58, %v2675_v57 }
 0xd9e   : > { %3583 = vmatmul.mubr.msk.f32.vlgmr.msra.gmra.mrb[20].mxu1 %vm1122_vm3, %v2306_v3  ;;  %v2677_v3 = vld [vmem:[%s4888_s9 + $0x40] sm:$0xff] }
 0xd9f   : > { %3708 = vmatpush3.bf16.msra.mxu0 %v3705_v6  ;;  %3712 = vmatpush3.bf16.msra.mxu1 %v3709_v13  ;;  %v3725_v36 = vpack.c.bf16 %v2678_v53, %v2677_v3  ;;  %v3308_v6 = vld [vmem:[%s4881_s2 + $0x5] ss:$0 sm:$0xff]  ;;  %v2818_v3 = vld [vmem:[%s4938_s22 + $0x8] sm:$0xff] }
 0xda0   : > { %3714 = vmatprep.subr.bf16.mxu1 %v3713_v44 }
 0xda3   : > { %3716 = vmatpush3.bf16.msra.mxu1 %v3713_v44 }
 0xda4   : > { %3718 = vmatprep.subr.bf16.mxu1 %v3717_v31 }
 0xda7   : > { %3720 = vmatpush3.bf16.msra.mxu1 %v3717_v31 }
 0xda8   : > { %3722 = vmatprep.subr.bf16.mxu1 %v3721_v2 }
 0xdab   : > { %3724 = vmatpush3.bf16.msra.mxu1 %v3721_v2  ;;  %v2817_v2 = vld [vmem:[%s4937_s30] sm:$0xff]  ;;  %s3094_s30 = sshll.u32 %s4342_s26, 4  ;;  %s4749_s30 = int_to_ptr.vmem [resolvable:$true] %s3094_s30 }
 0xdac   : > { %3726 = vmatprep.subr.bf16.mxu1 %v3725_v36  ;;  %v3733_v53 = vpack.c.bf16 %v2818_v3, %v2817_v2 }
 0xdae   : > { %3734 = vmatprep.subr.bf16.mxu0 %v3733_v53 }
 0xdaf   : > { %3728 = vmatpush3.bf16.msra.mxu1 %v3725_v36 }
 0xe6d   : > { %v2379_v56 = vpop.f32.mrb[18].mxu0 }
 0xe6e   : > { %2477 = vrot.lane.b32.xlu0 %v2379_v56, %s4018_s28  ;;  %v3579_v59 = vpop.f32.mrb[19].mxu0 }
 0xe6f   : > { %v2679_v59 = vld [vmem:[%s4888_s9 + $0x50] sm:$0xff] }
 0xe71   : > { %v2455_v61 = vpop.f32.mrb[20].mxu1 }
 0xe72   : > { %2479 = vrot.lane.b32.xlu1 %v2455_v61, %s4018_s28  ;;  %v3584_v7 = vpop.f32.mrb[21].mxu1  ;;  %v2680_v61 = vld [vmem:[%s4888_s9 + $0x58] sm:$0xff]  ;;  %s3883_s28 = scalar_lea.vmem %s4749_s30, 256 }
 0xe73   : > { %v3729_v9 = vpack.c.bf16 %v2680_v61, %v2679_v59  ;;  %p3884_p2 = scmp.ne.s32.totalorder %s4749_s30, %s3883_s28 }
 0xe75   : > { %3730 = vmatprep.subr.bf16.mxu1 %v3729_v9  ;;  %p3885_p3 = pnand %p3884_p2, %p4158_p10 }
 0xe76   : > { %3732 = vmatpush3.bf16.msra.mxu1 %v3729_v9 }
 0xe77   : > { %p3886_p4 = pneg %p3885_p3 }
 0xee0   : > { %v2478_v14 = vpop.permute.xlu0 %2477 }
 0xee1   : > { %v2489_v15 = vsel %vm2488_vm10, %v2486_v12, %v2478_v14  ;;  %v3244_v14 = vsel %vm4424_vm8, 1.0, %v4010_v46 }
 0xee2   : > { %3593 = vmatprep.mubr.msk.f32.mxu0 %vm582_vm0, %v2489_v15 }
 0xee4   : > { %v2480_v17 = vpop.permute.xlu1 %2479 }
 0xee5   : > { %v2490_v18 = vsel %vm2488_vm10, %v2487_v16, %v2480_v17 }
 0xee6   : > { %3594 = vmatmul.mubr.msk.f32.vlgmr.msra.gmra.mrb[20].mxu0 %vm582_vm0, %v2490_v18 }
 0xee7   : > { %3736 = vmatpush3.bf16.msra.mxu0 %v3733_v53 }
 0xfb9   : > { %v3595_v19 = vpop.f32.mrb[20].mxu0 }
 0xfba   : > { %v2578_v20 = vadd.f32 %v3595_v19, %v4241_v62  ;;  %v2568_v21 = vpop.f32.mrb[21].mxu0 }
 0xfbb   : > { %v2577_v22 = vadd.f32 %v2568_v21, %v4244_v63 }
 0xfbc   : > { %v4587_v23 = vadd.f32 %v3304_v47, %v2578_v20 }
 0xfbd   : > { %v4589_v24 = vadd.f32 %v3304_v47, %v2577_v22 }
 0xfbe   : > { %v2592_v49 = vsel %vm582_vm0, %v4587_v23, 0.0 }
 0xfbf   : > { %2593 = vadd.xlane.f32.xlu1 %v2592_v49  ;;  %v2589_v25 = vsel %vm582_vm0, %v4589_v24, 0.0 }
 0xfc0   : > { %2590 = vadd.xlane.f32.xlu0 %v2589_v25 }
0x104c   : > { %v2594_v26 = vpop.xlane.xlu1 %2593 }
0x104d   : > { %v2596_v27 = vmul.f32 0.03125, %v2594_v26  ;;  %v2591_v28 = vpop.xlane.xlu0 %2590 }
0x104e   : > { %v2595_v29 = vmul.f32 0.03125, %v2591_v28 }
0x104f   : > { %v2598_v62 = vsub.f32 %v4587_v23, %v2596_v27 }
0x1050   : > { %v2597_v63 = vsub.f32 %v4589_v24, %v2595_v29 }
0x1051   : > { %v2600_v38 = vmul.f32 %v2598_v62, %v2598_v62 }
0x1052   : > { %v2599_v30 = vmul.f32 %v2597_v63, %v2597_v63 }
0x1053   : > { %v2604_v1 = vsel %vm582_vm0, %v2600_v38, 0.0 }
0x1054   : > { %v2601_v33 = vsel %vm582_vm0, %v2599_v30, 0.0 }
0x1055   : > { %2602 = vadd.xlane.f32.xlu0 %v2601_v33 }
0x1059   : > { %2605 = vadd.xlane.f32.xlu0 %v2604_v1 }
0x10e2   : > { %v2603_v48 = vpop.xlane.xlu0 %2602 }
0x10e3   : > { %v2607_v35 = vmul.f32 0.03125, %v2603_v48 }
0x10e5   : > { %v2609_v51 = vadd.f32 1e-05, %v2607_v35 }
0x10e6   : > { %v2606_v52 = vpop.xlane.xlu0 %2605 }
0x10e7   : > { %3859 = vrsqrt.f32 %v2609_v51  ;;  %v2608_v54 = vmul.f32 0.03125, %v2606_v52 }
0x10e9   : > { %v2610_v55 = vadd.f32 1e-05, %v2608_v54 }
0x10eb   : > { %3861 = vrsqrt.f32 %v2610_v55 }
0x10f1   : > { %v3860_v4 = vpop.eup %3859 }
0x10f2   : > { %v2613_v41 = vmul.f32 %v3860_v4, %v2597_v63  ;;  %v2819_v4 = vld [vmem:[%s4938_s22 + $0x10] sm:$0xff] }
0x10f4   : > { %v2619_v56 = vmul.f32 %v3307_v5, %v2613_v41  ;;  %v2822_v41 = vld [vmem:[%s4892_s13] sm:$0xff] }
0x10f5   : > { %v3862_v7 = vpop.eup %3861 }
0x10f6   : > { %v2625_v10 = vadd.f32 %v3308_v6, %v2619_v56  ;;  %v2614_v0 = vmul.f32 %v3862_v7, %v2598_v62 }
0x10f8   : > { %v2627_v11 = vmul.f32 %v3243_v8, %v2625_v10  ;;  %v2620_v12 = vmul.f32 %v3307_v5, %v2614_v0  ;;  %v2820_v5 = vld [vmem:[%s4938_s22 + $0x18] sm:$0xff] }
0x10f9   : > { %v3737_v36 = vpack.c.bf16 %v2820_v5, %v2819_v4 }
0x10fa   : > { %2651 = vrot.lane.b32.xlu0 %v2627_v11, %s4019_s3  ;;  %v2626_v15 = vadd.f32 %v3308_v6, %v2620_v12  ;;  %v2630_v34 = vrot.slane %v2627_v11, 7  ;;  %v2640_v17 = vrot.slane %v2627_v11, 1  ;;  %v2823_v6 = vld [vmem:[%s4892_s13 + $0x8] sm:$0xff]  ;;  %v3314_v11 = vld [vmem:[%s4881_s2 + $0x6] ss:$0 sm:$0xff] }
0x10fb   : > { %3738 = vmatprep.subr.bf16.mxu0 %v3737_v36  ;;  %v3741_v56 = vpack.c.bf16 %v2823_v6, %v2822_v41 }
0x10fc   : > { %v2628_v60 = vmul.f32 %v3244_v14, %v2626_v15  ;;  %3740 = vmatpush3.bf16.msra.mxu0 %v3737_v36 }
0x10fd   : > { %3742 = vmatprep.subr.bf16.mxu0 %v3741_v56 }
0x10fe   : > { %2653 = vrot.lane.b32.xlu1 %v2628_v60, %s4019_s3  ;;  %v2631_v16 = vrot.slane %v2628_v60, 7  ;;  %v2641_v18 = vrot.slane %v2628_v60, 1 }
0x1100   : > { %v2643_v19 = vsel %vm2642_vm13, %v2640_v17, %v2641_v18  ;;  %v2634_v47 = vsel %vm2632_vm14, %v2631_v16, %v2630_v34  ;;  %v2633_v20 = vsel %vm2632_vm14, %v2630_v34, %v2631_v16  ;;  %v2644_v46 = vsel %vm2642_vm13, %v2641_v18, %v2640_v17  ;;  %v2824_v17 = vld [vmem:[%s4892_s13 + $0x10] sm:$0xff]  ;;  %v2825_v18 = vld [vmem:[%s4892_s13 + $0x18] sm:$0xff] }
0x1101   : > { %v2647_v37 = vsel %vm2639_vm12, 0.0, %v2643_v19  ;;  %v2648_v21 = vsel %vm2639_vm12, 0.0, %v2644_v46  ;;  %v2637_v25 = vsel %vm2629_vm15, 0.0, %v2634_v47  ;;  %v2638_v29 = vsel %vm2629_vm15, 0.0, %v2633_v20  ;;  %v2827_v46 = vld [vmem:[%s4892_s13 + $0x28] sm:$0xff] }
0x1102   : > { %2659 = vrot.lane.b32.xlu1 %v2647_v37, %s4020_s19  ;;  %v3745_v20 = vpack.c.bf16 %v2825_v18, %v2824_v17  ;;  %v2826_v37 = vld [vmem:[%s4892_s13 + $0x20] sm:$0xff] }
0x1106   : > { %2661 = vrot.lane.b32.xlu1 %v2648_v21, %s4020_s19  ;;  %v3749_v21 = vpack.c.bf16 %v2827_v46, %v2826_v37  ;;  %s3059_s19 = sand.u32 1, %s4139_s11   ;;  %s4021_s11 = smov [#allocation6]  }
0x1107   : > { %s4751_s27 = scalar_lea.sflag [#allocation7], %s3059_s19  ;;  %s3887_s3 = sshll.u32 %s4021_s11, 4  ;;  %s3888_s3 = int_to_ptr.vmem [resolvable:$false] %s3887_s3 }
0x1108   : > { %s3889_s6 = scalar_lea.vmem %s3888_s3, 512  ;;  %p3890_p5 = scmp.lt.s32.totalorder %s4749_s30, %s3888_s3 }
0x1109   : > { %p3891_p6 = scmp.lt.s32.totalorder %s3889_s6, %s3883_s28 }
0x110b   : > { %p3892_p7 = por %p3891_p6, %p3890_p5 }
0x110d   : > { %p3893_p8 = pnand %p3892_p7, %p3886_p4 }
0x116c   : > { %v2652_v49 = vpop.permute.xlu0 %2651 }
0x116d   : > { %v2665_v26 = vsel %vm582_vm0, %v2637_v25, %v2652_v49  ;;  %v2829_v49 = vld [vmem:[%s4892_s13 + $0x38] sm:$0xff] }
0x1170   : > { %v2654_v22 = vpop.permute.xlu1 %2653 }
0x1171   : > { %v2666_v62 = vsel %vm582_vm0, %v2638_v29, %v2654_v22  ;;  %v2828_v22 = vld [vmem:[%s4892_s13 + $0x30] sm:$0xff] }
0x1172   : > { %v3753_v25 = vpack.c.bf16 %v2829_v49, %v2828_v22 }
0x1174   : > { %v2660_v27 = vpop.permute.xlu1 %2659 }
0x1175   : > { %v2667_v28 = vsel %vm731_vm1, %v2665_v26, %v2660_v27  ;;  %v3316_v26 = vld [vmem:[%s4891_s12] ss:$0 sm:$0xff] }
0x1176   : > { %3620 = vmatprep.mubr.msk.f32.mxu1 %vm2688_vm2, %v2667_v28 }
0x1178   : > { %v2662_v63 = vpop.permute.xlu1 %2661 }
0x1179   : > { %v2668_v30 = vsel %vm731_vm1, %v2666_v62, %v2662_v63 }
0x117a   : > { %3621 = vmatmul.mubr.msk.f32.vlgmr.msra.gmra.mrb[22].mxu1 %vm2688_vm2, %v2668_v30 }
0x124d   : > { %v3622_v33 = vpop.f32.mrb[22].mxu1 }
0x124e   : > { %v2767_v38 = vadd.f32 %v3622_v33, %v3309_v32  ;;  %v2761_v1 = vpop.f32.mrb[23].mxu1 }
0x124f   : > { %v2762_v39 = vadd.f32 %v3309_v32, %v2761_v1  ;;  %v3319_v32 = vld [vmem:[%s4893_s14] ss:$0 sm:$0xff] }
0x1250   : > { %v2771_v40 = vmax.f32 %v2767_v38, 0.0 }
0x1251   : > { %v2770_v42 = vmax.f32 %v2762_v39, 0.0 }
0x1252   : > { %v2773_v13 = vmul.f32 %v3244_v14, %v2771_v40  ;;  %v3315_v14 = vld [vmem:[%s4881_s2 + $0x7] ss:$0 sm:$0xff] }
0x1253   : > { %v2772_v43 = vmul.f32 %v3243_v8, %v2770_v42 }
0x1254   : > { %v4659_v44 = vadd.f32 %v2773_v13, %v4587_v23 }
0x1255   : > { %v4662_v50 = vadd.f32 %v2772_v43, %v4589_v24 }
0x1256   : > { %v2782_v45 = vsel %vm582_vm0, %v4659_v44, 0.0 }
0x1257   : > { %2783 = vadd.xlane.f32.xlu1 %v2782_v45  ;;  %v2779_v31 = vsel %vm582_vm0, %v4662_v50, 0.0 }
0x1258   : > { %2780 = vadd.xlane.f32.xlu0 %v2779_v31 }
0x12e4   : > { %v2784_v48 = vpop.xlane.xlu1 %2783 }
0x12e5   : > { %v2786_v35 = vmul.f32 0.03125, %v2784_v48  ;;  %v2781_v51 = vpop.xlane.xlu0 %2780 }
0x12e6   : > { %v2785_v52 = vmul.f32 0.03125, %v2781_v51 }
0x12e7   : > { %v2788_v54 = vsub.f32 %v4659_v44, %v2786_v35 }
0x12e8   : > { %v2787_v23 = vsub.f32 %v4662_v50, %v2785_v52 }
0x12e9   : > { %v2790_v57 = vmul.f32 %v2788_v54, %v2788_v54 }
0x12ea   : > { %v2789_v55 = vmul.f32 %v2787_v23, %v2787_v23 }
0x12eb   : > { %v2794_v58 = vsel %vm582_vm0, %v2790_v57, 0.0 }
0x12ec   : > { %v2791_v24 = vsel %vm582_vm0, %v2789_v55, 0.0 }
0x12ed   : > { %2792 = vadd.xlane.f32.xlu0 %v2791_v24 }
0x12f1   : > { %2795 = vadd.xlane.f32.xlu0 %v2794_v58 }
0x137a   : > { %v2793_v59 = vpop.xlane.xlu0 %2792 }
0x137b   : > { %v2797_v61 = vmul.f32 0.03125, %v2793_v59 }
0x137d   : > { %v2799_v7 = vadd.f32 1e-05, %v2797_v61 }
0x137e   : > { %v2796_v8 = vpop.xlane.xlu0 %2795 }
0x137f   : > { %3863 = vrsqrt.f32 %v2799_v7  ;;  %v2798_v9 = vmul.f32 0.03125, %v2796_v8 }
0x1381   : > { %v2800_v10 = vadd.f32 1e-05, %v2798_v9 }
0x1383   : > { %3865 = vrsqrt.f32 %v2800_v10 }
0x1389   : > { %v3864_v0 = vpop.eup %3863 }
0x138a   : > { %v2803_v12 = vmul.f32 %v3864_v0, %v2787_v23 }
0x138c   : > { %v2809_v15 = vmul.f32 %v3314_v11, %v2803_v12 }
0x138d   : > { %v3866_v60 = vpop.eup %3865 }
0x138e   : > { %v2804_v34 = vmul.f32 %v3866_v60, %v2788_v54  ;;  %v2815_v16 = vadd.f32 %v3315_v14, %v2809_v15 }
0x1390   : > { %v2810_v19 = vmul.f32 %v3314_v11, %v2804_v34  ;;  %3631 = vmatprep.mubr.msk.f32.mxu0 %vm582_vm0, %v2815_v16 }
0x1392   : > { %v2816_v47 = vadd.f32 %v3315_v14, %v2810_v19 }
0x1394   : > { %3632 = vmatmul.mubr.msk.f32.vlgmr.msra.gmra.mrb[22].mxu0 %vm582_vm0, %v2816_v47 }
0x1395   : > { %3744 = vmatpush3.bf16.msra.mxu0 %v3741_v56 }
0x1396   : > { %3746 = vmatprep.subr.bf16.mxu0 %v3745_v20 }
0x1399   : > { %3748 = vmatpush3.bf16.msra.mxu0 %v3745_v20 }
0x139a   : > { %3750 = vmatprep.subr.bf16.mxu0 %v3749_v21 }
0x139d   : > { %3752 = vmatpush3.bf16.msra.mxu0 %v3749_v21 }
0x139e   : > { %3754 = vmatprep.subr.bf16.mxu0 %v3753_v25 }
0x13a1   : > { %3756 = vmatpush3.bf16.msra.mxu0 %v3753_v25 }
0x1467   : > { %v3633_v27 = vpop.f32.mrb[22].mxu0 }
0x1468   : > { %v2915_v28 = vadd.f32 %v3633_v27, %v3316_v26  ;;  %v2909_v29 = vpop.f32.mrb[23].mxu0 }
0x1469   : > { %v2910_v62 = vadd.f32 %v3316_v26, %v2909_v29 }
0x146a   : > { %v2919_v30 = vmax.f32 %v2915_v28, 0.0 }
0x146b   : > { %v2918_v63 = vmax.f32 %v2910_v62, 0.0 }
0x146d   : > { %3650 = vmatprep.mubr.msk.f32.mxu0 %vm731_vm1, %v2918_v63 }
0x146e   : > { %3651 = vmatmul.mubr.msk.f32.vlgmr.msra.gmra.mrb[24].mxu0 %vm731_vm1, %v2919_v30 }
0x1541   : > { %v3652_v33 = vpop.f32.mrb[24].mxu0 }
0x1542   : > { %v3004_v38 = vadd.f32 %v3652_v33, %v3319_v32  ;;  %v2998_v1 = vpop.f32.mrb[25].mxu0 }
0x1543   : > { %v2999_v39 = vadd.f32 %v3319_v32, %v2998_v1 }
0x1544   : > { %v3008_v40 = vmul.f32 0.5, %v3004_v38 }
0x1545   : > { %v3007_v42 = vmul.f32 0.5, %v2999_v39 }
0x1546   : > { %v3010_v13 = vadd.f32 %v3008_v40, %v4659_v44 }
0x1547   : > { %v3009_v43 = vadd.f32 %v3007_v42, %v4662_v50 }
0x1548   : > { %v3017_v45 = vsel %vm582_vm0, %v3010_v13, 0.0 }
0x1549   : > { %3018 = vadd.xlane.f32.xlu1 %v3017_v45  ;;  %v3014_v31 = vsel %vm582_vm0, %v3009_v43, 0.0 }
0x154a   : > { %3015 = vadd.xlane.f32.xlu0 %v3014_v31 }
0x15d6   : > { %v3019_v48 = vpop.xlane.xlu1 %3018 }
0x15d7   : > { %v3021_v35 = vmul.f32 0.03125, %v3019_v48  ;;  %v3016_v51 = vpop.xlane.xlu0 %3015 }
0x15d8   : > { %v3020_v52 = vmul.f32 0.03125, %v3016_v51 }
0x15d9   : > { %v4728_v54 = vsub.f32 %v3010_v13, %v3021_v35 }
0x15da   : > { %v4730_v23 = vsub.f32 %v3009_v43, %v3020_v52 }
0x15db   : > { %v3025_v44 = vmul.f32 %v4728_v54, %v4728_v54 }
0x15dc   : > { %v3024_v50 = vmul.f32 %v4730_v23, %v4730_v23 }
0x15dd   : > { %v3029_v55 = vsel %vm582_vm0, %v3025_v44, 0.0 }
0x15de   : > { %3030 = vadd.xlane.f32.xlu1 %v3029_v55  ;;  %v3026_v24 = vsel %vm582_vm0, %v3024_v50, 0.0 }
0x15df   : > { %3027 = vadd.xlane.f32.xlu0 %v3026_v24 }
0x15e0   : > { %3896 = shalt.err (!%p3893_p8)
}
0x15e1   : > { %s3897_s26 = scalar_lea.hbm %s4746_s5, 256  ;;  %s3901_s4 = scalar_lea.hbm %s4895_s16, 512 }
0x15e2   : > { %p3898_p9 = scmp.ne.s32.totalorder %s4746_s5, %s3897_s26  ;;  %p3902_p0 = scmp.lt.u32.totalorder %s4746_s5, %s4895_s16 }
0x15e3   : > { %p3903_p1 = scmp.lt.u32.totalorder %s3901_s4, %s3897_s26  ;;  %p3905_p3 = scmp.lt.u32.totalorder %s3897_s26, %s4746_s5 }
0x15e4   : > { %p3899_p12 = pnand %p3898_p9, %p4158_p10 }
0x15e5   : > { %p3904_p2 = por %p3903_p1, %p3902_p0 }
0x15e6   : > { %p3900_p13 = pneg %p3899_p12 }
0x15e7   : > { %p3906_p4 = por %p3905_p3, %p3904_p2 }
0x15e9   : > { %p3907_p5 = pnand %p3906_p4, %p3900_p13 }
0x15eb   : > { %3910 = shalt.err (!%p3907_p5)
}
0x15ec   : > { %s4022_s6 = smov 128   ;;  %s4939_s28 = smov 8  }
0x15ed   : > { %3758 = dma.vmem_to_hbm [thread:$0]  (%p4158_p10), %s4749_s30, 256, %s4746_s5, %s4751_s27, %s4022_s6, %s4022_s6, %s4939_s28  }
0x15ee   : > { %s4782_s26 = scalar_lea.hbm %s4896_s17, %s4740_s21  ;;  %s3110_s4 = sshll.u32 %s4321_s20, 4  ;;  %s4785_s4 = int_to_ptr.vmem [resolvable:$true] %s3110_s4 }
0x15ef   : > { %s3911_s11 = scalar_lea.vmem %s4785_s4, 256  ;;  %s4023_s3 = smov [#allocation8]  }
0x15f0   : > { %p3912_p6 = scmp.ne.s32.totalorder %s4785_s4, %s3911_s11  ;;  %s3915_s7 = sshll.u32 %s4023_s3, 4  ;;  %s3916_s7 = int_to_ptr.vmem [resolvable:$false] %s3915_s7 }
0x15f1   : > { %s3917_s5 = scalar_lea.vmem %s3916_s7, 512  ;;  %p3918_p9 = scmp.lt.s32.totalorder %s4785_s4, %s3916_s7 }
0x15f2   : > { %p3913_p7 = pnand %p3912_p6, %p4158_p10  ;;  %p3919_p12 = scmp.lt.s32.totalorder %s3917_s5, %s3911_s11 }
0x15f4   : > { %p3914_p8 = pneg %p3913_p7  ;;  %p3920_p13 = por %p3919_p12, %p3918_p9 }
0x15f6   : > { %p3921_p0 = pnand %p3920_p13, %p3914_p8 }
0x15f8   : > { %3924 = shalt.err (!%p3921_p0)
}
0x15f9   : > { %s3925_s20 = scalar_lea.hbm %s4782_s26, 256  ;;  %s3929_s25 = scalar_lea.hbm %s4896_s17, 512 }
0x15fa   : > { %p3926_p1 = scmp.ne.s32.totalorder %s4782_s26, %s3925_s20  ;;  %p3930_p4 = scmp.lt.u32.totalorder %s4782_s26, %s4896_s17 }
0x15fb   : > { %p3931_p5 = scmp.lt.u32.totalorder %s3929_s25, %s3925_s20  ;;  %p3933_p7 = scmp.lt.u32.totalorder %s3925_s20, %s4782_s26 }
0x15fc   : > { %p3927_p2 = pnand %p3926_p1, %p4158_p10 }
0x15fd   : > { %p3932_p6 = por %p3931_p5, %p3930_p4 }
0x15fe   : > { %p3928_p3 = pneg %p3927_p2 }
0x15ff   : > { %p3934_p8 = por %p3933_p7, %p3932_p6 }
0x1601   : > { %p3935_p9 = pnand %p3934_p8, %p3928_p3 }
0x1603   : > { %3938 = shalt.err (!%p3935_p9)
}
0x1604   : > { %3759 = dma.vmem_to_hbm [thread:$0]  (%p4158_p10), %s4785_s4, 256, %s4782_s26, %s4751_s27, %s4022_s6, %s4022_s6, %s4939_s28  }
0x1605   : > { %v3324_v36 = vld [vmem:[%s4881_s2 + $0x8] ss:$0 sm:$0xff]  ;;  %v3325_v56 = vld [vmem:[%s4881_s2 + $0x9] ss:$0 sm:$0xff]  ;;  %s526_s4 = scalar_lea.vmem [#allocation4], %s4311_s1  ;;  %s4825_s25 = scalar_lea.hbm %s4894_s15, %s4740_s21 }
0x1606   : > { %s3078_s20 = sshll.u32 %s526_s4, 4  ;;  %s4940_s3 = sand.u32 1, %s3999_s0   ;;  %s4827_s20 = int_to_ptr.vmem [resolvable:$true] %s3078_s20 }
0x1607   : > { %s4833_s1 = scalar_lea.sflag [#allocation5], %s4940_s3  ;;  %s3939_s7 = scalar_lea.vmem %s4827_s20, 256 }
0x1608   : > { %p3940_p12 = scmp.ne.s32.totalorder %s4827_s20, %s3939_s7  ;;  %s4024_s11 = smov [#allocation4]  }
0x1609   : > { %s3943_s21 = sshll.u32 %s4024_s11, 4  ;;  %s3944_s21 = int_to_ptr.vmem [resolvable:$false] %s3943_s21 }
0x160a   : > { %p3941_p13 = pnand %p3940_p12, %p4158_p10  ;;  %s3945_s5 = scalar_lea.vmem %s3944_s21, 512 }
0x160b   : > { %p3946_p1 = scmp.lt.s32.totalorder %s4827_s20, %s3944_s21  ;;  %p3947_p2 = scmp.lt.s32.totalorder %s3945_s5, %s3939_s7 }
0x160c   : > { %p3942_p0 = pneg %p3941_p13 }
0x160d   : > { %p3948_p3 = por %p3947_p2, %p3946_p1 }
0x160f   : > { %p3949_p4 = pnand %p3948_p3, %p3942_p0 }
0x166b   : > { %v3031_v57 = vpop.xlane.xlu1 %3030 }
0x166c   : > { %v3033_v58 = vmul.f32 0.03125, %v3031_v57  ;;  %v3028_v2 = vpop.xlane.xlu0 %3027 }
0x166d   : > { %v3032_v3 = vmul.f32 0.03125, %v3028_v2 }
0x166e   : > { %v3035_v53 = vadd.f32 1e-05, %v3033_v58 }
0x166f   : > { %v3034_v4 = vadd.f32 1e-05, %v3032_v3 }
0x1670   : > { %3867 = vrsqrt.f32 %v3035_v53 }
0x1671   : > { %3869 = vrsqrt.f32 %v3034_v4 }
0x167a   : > { %v3868_v5 = vpop.eup %3867 }
0x167b   : > { %v3870_v41 = vpop.eup %3869  ;;  %v3039_v6 = vmul.f32 %v3868_v5, %v4728_v54 }
0x167c   : > { %v3038_v59 = vmul.f32 %v3870_v41, %v4730_v23 }
0x167d   : > { %v3045_v61 = vmul.f32 %v3324_v36, %v3039_v6 }
0x167e   : > { %v3044_v7 = vmul.f32 %v3324_v36, %v3038_v59 }
0x167f   : > { %v3051_v8 = vadd.f32 %v3325_v56, %v3045_v61 }
0x1680   : > { %v3050_v9 = vadd.f32 %v3325_v56, %v3044_v7 }
0x1681   : > { %3053 = vst.msk [vmem:[%s526_s4 + $0x8] sm:$0xff] %vm582_vm0, %v3051_v8 }
0x1682   : > { %3052 = vst.msk [vmem:[%s526_s4] sm:$0xff] %vm582_vm0, %v3050_v9 }
0x1683   : > { %3952 = shalt.err (!%p3949_p4)
}
0x1684   : > { %s3953_s27 = scalar_lea.hbm %s4825_s25, 256  ;;  %s3957_s30 = scalar_lea.hbm %s4894_s15, 512 }
0x1685   : > { %p3954_p5 = scmp.ne.s32.totalorder %s4825_s25, %s3953_s27  ;;  %p3958_p8 = scmp.lt.u32.totalorder %s4825_s25, %s4894_s15 }
0x1686   : > { %p3959_p9 = scmp.lt.u32.totalorder %s3957_s30, %s3953_s27  ;;  %p3961_p13 = scmp.lt.u32.totalorder %s3953_s27, %s4825_s25 }
0x1687   : > { %p3955_p6 = pnand %p3954_p5, %p4158_p10 }
0x1688   : > { %p3960_p12 = por %p3959_p9, %p3958_p8 }
0x1689   : > { %p3956_p7 = pneg %p3955_p6 }
0x168a   : > { %p3962_p0 = por %p3961_p13, %p3960_p12 }
0x168c   : > { %p3963_p1 = pnand %p3962_p0, %p3956_p7 }
0x168e   : > { %3966 = shalt.err (!%p3963_p1)
}
0x168f   : > { %3757 = dma.vmem_to_hbm [thread:$0]  (%p4158_p10), %s4827_s20, 256, %s4825_s25, %s4833_s1, %s4022_s6, %s4022_s6, %s4939_s28  }
0x1690 PF: > { %p3773_p2 = scmp.ge.s32.totalorder %s4007_s18, 2  ;;  %s3125_s7 = sand.u32 1, %s3995_s29  }
0x1691   : > { %s3126_s11 = scalar_lea.sflag [#allocation5], %s3125_s7 }
0x1692   : > { %p3764_p3 = pnand %p3773_p2, %p4162_p11 }
0x1694   : > { %3986 = dma.done.wait (!%p3764_p3), %s3126_s11, 256  }
0x1695   : > { %3988 = vsyncadd (!%p3764_p3), %s3126_s11, 4294967040  ;;  %s4941_s23 = sadd.s32 4294967294, %s4007_s18  }
0x1696   : > { %s3134_s21 = sand.u32 1, %s4941_s23  }
0x1697   : > { %s3135_s5 = scalar_lea.sflag [#allocation7], %s3134_s21 }
0x1698   : > { %3990 = dma.done.wait (!%p3764_p3), %s3135_s5, 512  }
0x1699   : > { %3992 = vsyncadd (!%p3764_p3), %s3135_s5, 4294966784  ;;  %s4942_s18 = sld [smem:[#allocation13_spill]]  ;;  %s4943_s6 = sld [smem:[#allocation12_spill]] }
0x169a   : > { %s4944_s30 = sld [smem:[#allocation14_spill]]  ;;  %s4945_s29 = smov %s3999_s0 }
0x169f   : > { %p37_p10 = scmp.ge.s32.totalorder %s4942_s18, 4   ;;  %s4946_s0 = smov %s4943_s6 }
0x16a1   :  { %39 = sbr.rel (!%p37_p10) target bundleno = 27 (0x1b), region = 150 }
0x16a8   :  { %3149 = vsyncpa [#allocation5], 1 }
0x16a9   :  { %3151 = vsyncpa [#allocation5 + $0x1], 1 }
0x16aa   :  { %3152 = vsyncpa [#allocation7], 1 }
0x16ab   :  { %3154 = vsyncpa [#allocation7 + $0x1], 1 }

</bundles_post_ra>
